<compile_context>
chip_gen: v7x
topology: tpu7x:2x2x1
jax: 0.10.0
libtpu: 0.0.40
codegen_flags: <defaults>
</compile_context>

<pallas_src>
import functools
import math

import jax
import jax.numpy as jnp
from jax.experimental import pallas as pl
from jax.experimental.pallas import tpu as pltpu


def _conv_kernel(x_ref, w_ref, b_ref, o_ref, *, KH, KW, sh, sw, hs, OH, OW, groups):
    # x_ref: (1, sh*sw*hs, Ws, Cin)   residue-plane padded input for ONE image
    # w_ref: (KH, KW, Cin // groups, Cout)
    # b_ref: (1, Cout)
    # o_ref: (1, OH, OW, Cout)
    cin = x_ref.shape[-1]
    cout = w_ref.shape[-1]
    cin_g = cin // groups
    cout_g = cout // groups

    acc = [jnp.zeros((OH, OW, cout_g), jnp.float32) for _ in range(groups)]

    for ki in range(KH):                      # static loops over the kernel taps
        rh, qh = ki % sh, ki // sh
        for kj in range(KW):
            rw, qw = kj % sw, kj // sw
            plane = rh * sw + rw
            # Contiguous (OH, OW, Cin) window of the residue plane (static offsets).
            xs = x_ref[0, pl.ds(plane * hs + qh, OH), pl.ds(qw, OW), :].astype(jnp.float32)
            wk = w_ref[ki, kj].astype(jnp.float32)            # (Cin_g, Cout)
            for g in range(groups):
                xg = xs if groups == 1 else xs[:, :, g * cin_g:(g + 1) * cin_g]
                wg = wk if groups == 1 else wk[:, g * cout_g:(g + 1) * cout_g]
                # Row-batched MXU matmul: batch = OH, contract = Cin_g.
                wb = jnp.broadcast_to(wg, (OH, cin_g, cout_g))
                acc[g] = acc[g] + jnp.einsum(
                    "hwc,hcd->hwd", xg, wb, preferred_element_type=jnp.float32)

    y = acc[0] if groups == 1 else jnp.concatenate(acc, axis=-1)   # (OH, OW, Cout)
    y = y + b_ref[...].astype(jnp.float32)                          # (1, Cout) broadcasts
    o_ref[0] = y.astype(o_ref.dtype)


def _conv2d_ssp_impl(x, weight, bias, *, stride, groups):
    sh, sw = stride
    n, cin, h, w = x.shape
    cout, cin_g, KH, KW = weight.shape
    assert cin_g * groups == cin, "groups inconsistent with weight/in_channels"

    # --- static SAME padding (exactly the PyTorch forward's arithmetic) -------------
    oh = math.ceil(h / sh)
    ow = math.ceil(w / sw)
    extra_v = (oh - 1) * sh - h + KH
    extra_h = (ow - 1) * sw - w + KW
    top = extra_v // 2
    bottom = extra_v - top
    left = extra_h // 2
    right = extra_h - left

    # Channels minor (NHWC) so the C_in contraction feeds the MXU.
    x_nhwc = jnp.transpose(x, (0, 2, 3, 1))

    # F.pad semantics: negative pad == crop.
    crop_t, crop_b = max(-top, 0), max(-bottom, 0)
    crop_l, crop_r = max(-left, 0), max(-right, 0)
    if crop_t or crop_b or crop_l or crop_r:
        x_nhwc = x_nhwc[:, crop_t:h - crop_b, crop_l:w - crop_r, :]
    pt, pb, plft, prgt = max(top, 0), max(bottom, 0), max(left, 0), max(right, 0)

    hp = h - crop_t - crop_b + pt + pb           # == h + extra_v
    wp = w - crop_l - crop_r + plft + prgt       # == w + extra_h
    hs = -(-hp // sh)                            # residue-plane height
    ws = -(-wp // sw)                            # residue-plane width

    x_pad = jnp.pad(
        x_nhwc,
        ((0, 0), (pt, pb + hs * sh - hp), (plft, prgt + ws * sw - wp), (0, 0)))

    # Space-to-depth into stride residue planes (identity when stride == 1):
    #   x_planes[n, (rh*sw + rw)*hs + i, j, c] == x_pad[n, i*sh + rh, j*sw + rw, c]
    x_planes = x_pad.reshape(n, hs, sh, ws, sw, cin)
    x_planes = jnp.transpose(x_planes, (0, 2, 4, 1, 3, 5))
    x_planes = x_planes.reshape(n, sh * sw * hs, ws, cin)

    w_hwio = jnp.transpose(weight, (2, 3, 1, 0))               # (KH, KW, Cin_g, Cout)
    if bias is None:
        b2d = jnp.zeros((1, cout), x.dtype)
    else:
        b2d = bias.reshape(1, cout)

    itemsize = jnp.dtype(x.dtype).itemsize
    x_block_bytes = sh * sw * hs * ws * cin * itemsize
    o_block_bytes = oh * ow * cout * itemsize
    acc_bytes = oh * ow * cout * 4 + oh * cin_g * cout * 4
    need = (2 * (x_block_bytes + o_block_bytes)
            + w_hwio.size * itemsize + acc_bytes + (4 << 20))
    vmem_limit = int(min(max(need, 32 << 20), 64 << 20))       # safe on v5e/v6e/v7x

    kernel = functools.partial(
        _conv_kernel, KH=KH, KW=KW, sh=sh, sw=sw, hs=hs, OH=oh, OW=ow, groups=groups)

    out_nhwc = pl.pallas_call(
        kernel,
        out_shape=jax.ShapeDtypeStruct((n, oh, ow, cout), x.dtype),
        grid_spec=pltpu.PrefetchScalarGridSpec(
            num_scalar_prefetch=0,
            grid=(n,),
            in_specs=[
                pl.BlockSpec((1, sh * sw * hs, ws, cin), lambda i: (i, 0, 0, 0)),
                pl.BlockSpec((KH, KW, cin_g, cout), lambda i: (0, 0, 0, 0)),
                pl.BlockSpec((1, cout), lambda i: (0, 0)),
            ],
            out_specs=pl.BlockSpec((1, oh, ow, cout), lambda i: (i, 0, 0, 0)),
        ),
        compiler_params=pltpu.CompilerParams(
            dimension_semantics=("parallel",),
            vmem_limit_bytes=vmem_limit,
        ),
        cost_estimate=pl.CostEstimate(
            flops=2 * n * oh * ow * KH * KW * cin_g * cout,
            transcendentals=0,
            bytes_accessed=(x_planes.size * itemsize
                            + w_hwio.size * itemsize
                            + n * oh * ow * cout * itemsize),
        ),
    )(x_planes, w_hwio, b2d)

    return jnp.transpose(out_nhwc, (0, 3, 1, 2))               # back to PyTorch NCHW


_conv2d_ssp_jit = jax.jit(_conv2d_ssp_impl, static_argnames=("stride", "groups"))


def _normalize_2(v):
    if isinstance(v, int):
        return (v, v)
    v = tuple(v)
    return (v[0], v[0]) if len(v) == 1 else (v[0], v[1])


def conv2d_static_same_padding(x, weight, bias=None, stride=1, groups=1):
    """Forward of Conv2dStaticSamePadding (dilation is always 1 in the module)."""
    sh, sw = _normalize_2(stride)
    return _conv2d_ssp_jit(x, weight, bias, stride=(sh, sw), groups=int(groups))


# ----------------------------- pure-JAX reference ------------------------------------
def _ref_conv2d_static_same_padding(x, weight, bias, stride, groups=1):
    sh, sw = stride
    _, _, h, w = x.shape
    _, _, KH, KW = weight.shape
    oh, ow = math.ceil(h / sh), math.ceil(w / sw)
    extra_v = (oh - 1) * sh - h + KH
    extra_h = (ow - 1) * sw - w + KW
    top = extra_v // 2
    bottom = extra_v - top
    left = extra_h // 2
    right = extra_h - left
    out = jax.lax.conv_general_dilated(
        x, weight, window_strides=(sh, sw),
        padding=((top, bottom), (left, right)),
        dimension_numbers=("NCHW", "OIHW", "NCHW"),
        feature_group_count=groups)
    if bias is not None:
        out = out + bias[None, :, None, None]
    return out


if __name__ == "__main__":
    key = jax.random.PRNGKey(0)
    kx, kwt, kb = jax.random.split(key, 3)

    N, Cin, H, W = 2, 4, 16, 16
    Cout, K = 8, 3

    x = jax.random.normal(kx, (N, Cin, H, W), dtype=jnp.float32)
    weight = 0.1 * jax.random.normal(kwt, (Cout, Cin, K, K), dtype=jnp.float32)
    bias = 0.1 * jax.random.normal(kb, (Cout,), dtype=jnp.float32)

    # stride=1 (symmetric pad) and stride=2 (asymmetric SAME pad: left=0, right=1)
    for stride in (1, 2):
        y = conv2d_static_same_padding(x, weight, bias, stride=stride)
        y = jax.block_until_ready(y)
        ref = _ref_conv2d_static_same_padding(x, weight, bias, (stride, stride))
        assert y.shape == ref.shape, (y.shape, ref.shape)
        assert jnp.allclose(y, ref, atol=1e-4, rtol=1e-4), f"mismatch at stride={stride}"

    print("KERNEL_OK")
</pallas_src>

<mosaic_0001>
module attributes {stable_mosaic.version = 11 : i64} {
  func.func @_conv_kernel(%arg0: i32, %arg1: memref<1x18x18x4xf32, #tpu.memory_space<vmem>>, %arg2: memref<3x3x4x8xf32, #tpu.memory_space<vmem>>, %arg3: memref<1x8xf32, #tpu.memory_space<vmem>>, %arg4: memref<1x16x16x8xf32, #tpu.memory_space<vmem>>) attributes {dimension_semantics = [#tpu.dimension_semantics<parallel>], iteration_bounds = array<i64: 2>, scalar_prefetch = 0 : i64, scratch_operands = 0 : i64, tpu.core_type = #tpu.core_type<tc>, window_params = [{transform_indices = @transform_0, window_bounds = array<i64: 1, 18, 18, 4>}, {pipeline_mode = #tpu.pipeline_mode<synchronous>, transform_indices = @transform_1, window_bounds = array<i64: 3, 3, 4, 8>}, {pipeline_mode = #tpu.pipeline_mode<synchronous>, transform_indices = @transform_2, window_bounds = array<i64: 1, 8>}, {transform_indices = @transform_3, window_bounds = array<i64: 1, 16, 16, 8>}]} {
    %cst = arith.constant 0.000000e+00 : f32
    %0 = vector.broadcast %cst : f32 to vector<16x16x8xf32>
    %c0 = arith.constant 0 : index
    %c0_0 = arith.constant 0 : index
    %c0_1 = arith.constant 0 : index
    %c0_2 = arith.constant 0 : index
    %1 = vector.load %arg1[%c0, %c0_0, %c0_1, %c0_2] : memref<1x18x18x4xf32, #tpu.memory_space<vmem>>, vector<1x16x16x4xf32>
    %2 = vector.shape_cast %1 : vector<1x16x16x4xf32> to vector<16x16x4xf32>
    %c0_3 = arith.constant 0 : index
    %c0_4 = arith.constant 0 : index
    %c0_5 = arith.constant 0 : index
    %c0_6 = arith.constant 0 : index
    %3 = vector.load %arg2[%c0_3, %c0_4, %c0_5, %c0_6] : memref<3x3x4x8xf32, #tpu.memory_space<vmem>>, vector<1x1x4x8xf32>
    %4 = vector.shape_cast %3 : vector<1x1x4x8xf32> to vector<4x8xf32>
    %5 = vector.shape_cast %4 : vector<4x8xf32> to vector<1x4x8xf32>
    %6 = vector.broadcast %5 : vector<1x4x8xf32> to vector<16x4x8xf32>
    "tpu.trace_start"() <{level = 10 : i32, message = "hwc,hcd->hwd"}> : () -> ()
    %cst_7 = arith.constant dense<0.000000e+00> : vector<16x16x8xf32>
    %7 = tpu.matmul %2, %6, %cst_7 {dimension_numbers = #tpu.dot_dimension_numbers<[2], [1], [1], [2], [0, 0, 0, 1, 1, 2], [0], [0]>} : vector<16x16x4xf32>, vector<16x4x8xf32>, vector<16x16x8xf32> -> vector<16x16x8xf32>
    "tpu.trace_stop"() : () -> ()
    %8 = arith.addf %0, %7 : vector<16x16x8xf32>
    %c0_8 = arith.constant 0 : index
    %c0_9 = arith.constant 0 : index
    %c1 = arith.constant 1 : index
    %c0_10 = arith.constant 0 : index
    %9 = vector.load %arg1[%c0_8, %c0_9, %c1, %c0_10] : memref<1x18x18x4xf32, #tpu.memory_space<vmem>>, vector<1x16x16x4xf32>
    %10 = vector.shape_cast %9 : vector<1x16x16x4xf32> to vector<16x16x4xf32>
    %c0_11 = arith.constant 0 : index
    %c1_12 = arith.constant 1 : index
    %c0_13 = arith.constant 0 : index
    %c0_14 = arith.constant 0 : index
    %11 = vector.load %arg2[%c0_11, %c1_12, %c0_13, %c0_14] : memref<3x3x4x8xf32, #tpu.memory_space<vmem>>, vector<1x1x4x8xf32>
    %12 = vector.shape_cast %11 : vector<1x1x4x8xf32> to vector<4x8xf32>
    %13 = vector.shape_cast %12 : vector<4x8xf32> to vector<1x4x8xf32>
    %14 = vector.broadcast %13 : vector<1x4x8xf32> to vector<16x4x8xf32>
    "tpu.trace_start"() <{level = 10 : i32, message = "hwc,hcd->hwd"}> : () -> ()
    %cst_15 = arith.constant dense<0.000000e+00> : vector<16x16x8xf32>
    %15 = tpu.matmul %10, %14, %cst_15 {dimension_numbers = #tpu.dot_dimension_numbers<[2], [1], [1], [2], [0, 0, 0, 1, 1, 2], [0], [0]>} : vector<16x16x4xf32>, vector<16x4x8xf32>, vector<16x16x8xf32> -> vector<16x16x8xf32>
    "tpu.trace_stop"() : () -> ()
    %16 = arith.addf %8, %15 : vector<16x16x8xf32>
    %c0_16 = arith.constant 0 : index
    %c0_17 = arith.constant 0 : index
    %c2 = arith.constant 2 : index
    %c0_18 = arith.constant 0 : index
    %17 = vector.load %arg1[%c0_16, %c0_17, %c2, %c0_18] : memref<1x18x18x4xf32, #tpu.memory_space<vmem>>, vector<1x16x16x4xf32>
    %18 = vector.shape_cast %17 : vector<1x16x16x4xf32> to vector<16x16x4xf32>
    %c0_19 = arith.constant 0 : index
    %c2_20 = arith.constant 2 : index
    %c0_21 = arith.constant 0 : index
    %c0_22 = arith.constant 0 : index
    %19 = vector.load %arg2[%c0_19, %c2_20, %c0_21, %c0_22] : memref<3x3x4x8xf32, #tpu.memory_space<vmem>>, vector<1x1x4x8xf32>
    %20 = vector.shape_cast %19 : vector<1x1x4x8xf32> to vector<4x8xf32>
    %21 = vector.shape_cast %20 : vector<4x8xf32> to vector<1x4x8xf32>
    %22 = vector.broadcast %21 : vector<1x4x8xf32> to vector<16x4x8xf32>
    "tpu.trace_start"() <{level = 10 : i32, message = "hwc,hcd->hwd"}> : () -> ()
    %cst_23 = arith.constant dense<0.000000e+00> : vector<16x16x8xf32>
    %23 = tpu.matmul %18, %22, %cst_23 {dimension_numbers = #tpu.dot_dimension_numbers<[2], [1], [1], [2], [0, 0, 0, 1, 1, 2], [0], [0]>} : vector<16x16x4xf32>, vector<16x4x8xf32>, vector<16x16x8xf32> -> vector<16x16x8xf32>
    "tpu.trace_stop"() : () -> ()
    %24 = arith.addf %16, %23 : vector<16x16x8xf32>
    %c0_24 = arith.constant 0 : index
    %c1_25 = arith.constant 1 : index
    %c0_26 = arith.constant 0 : index
    %c0_27 = arith.constant 0 : index
    %25 = vector.load %arg1[%c0_24, %c1_25, %c0_26, %c0_27] : memref<1x18x18x4xf32, #tpu.memory_space<vmem>>, vector<1x16x16x4xf32>
    %26 = vector.shape_cast %25 : vector<1x16x16x4xf32> to vector<16x16x4xf32>
    %c1_28 = arith.constant 1 : index
    %c0_29 = arith.constant 0 : index
    %c0_30 = arith.constant 0 : index
    %c0_31 = arith.constant 0 : index
    %27 = vector.load %arg2[%c1_28, %c0_29, %c0_30, %c0_31] : memref<3x3x4x8xf32, #tpu.memory_space<vmem>>, vector<1x1x4x8xf32>
    %28 = vector.shape_cast %27 : vector<1x1x4x8xf32> to vector<4x8xf32>
    %29 = vector.shape_cast %28 : vector<4x8xf32> to vector<1x4x8xf32>
    %30 = vector.broadcast %29 : vector<1x4x8xf32> to vector<16x4x8xf32>
    "tpu.trace_start"() <{level = 10 : i32, message = "hwc,hcd->hwd"}> : () -> ()
    %cst_32 = arith.constant dense<0.000000e+00> : vector<16x16x8xf32>
    %31 = tpu.matmul %26, %30, %cst_32 {dimension_numbers = #tpu.dot_dimension_numbers<[2], [1], [1], [2], [0, 0, 0, 1, 1, 2], [0], [0]>} : vector<16x16x4xf32>, vector<16x4x8xf32>, vector<16x16x8xf32> -> vector<16x16x8xf32>
    "tpu.trace_stop"() : () -> ()
    %32 = arith.addf %24, %31 : vector<16x16x8xf32>
    %c0_33 = arith.constant 0 : index
    %c1_34 = arith.constant 1 : index
    %c1_35 = arith.constant 1 : index
    %c0_36 = arith.constant 0 : index
    %33 = vector.load %arg1[%c0_33, %c1_34, %c1_35, %c0_36] : memref<1x18x18x4xf32, #tpu.memory_space<vmem>>, vector<1x16x16x4xf32>
    %34 = vector.shape_cast %33 : vector<1x16x16x4xf32> to vector<16x16x4xf32>
    %c1_37 = arith.constant 1 : index
    %c1_38 = arith.constant 1 : index
    %c0_39 = arith.constant 0 : index
    %c0_40 = arith.constant 0 : index
    %35 = vector.load %arg2[%c1_37, %c1_38, %c0_39, %c0_40] : memref<3x3x4x8xf32, #tpu.memory_space<vmem>>, vector<1x1x4x8xf32>
    %36 = vector.shape_cast %35 : vector<1x1x4x8xf32> to vector<4x8xf32>
    %37 = vector.shape_cast %36 : vector<4x8xf32> to vector<1x4x8xf32>
    %38 = vector.broadcast %37 : vector<1x4x8xf32> to vector<16x4x8xf32>
    "tpu.trace_start"() <{level = 10 : i32, message = "hwc,hcd->hwd"}> : () -> ()
    %cst_41 = arith.constant dense<0.000000e+00> : vector<16x16x8xf32>
    %39 = tpu.matmul %34, %38, %cst_41 {dimension_numbers = #tpu.dot_dimension_numbers<[2], [1], [1], [2], [0, 0, 0, 1, 1, 2], [0], [0]>} : vector<16x16x4xf32>, vector<16x4x8xf32>, vector<16x16x8xf32> -> vector<16x16x8xf32>
    "tpu.trace_stop"() : () -> ()
    %40 = arith.addf %32, %39 : vector<16x16x8xf32>
    %c0_42 = arith.constant 0 : index
    %c1_43 = arith.constant 1 : index
    %c2_44 = arith.constant 2 : index
    %c0_45 = arith.constant 0 : index
    %41 = vector.load %arg1[%c0_42, %c1_43, %c2_44, %c0_45] : memref<1x18x18x4xf32, #tpu.memory_space<vmem>>, vector<1x16x16x4xf32>
    %42 = vector.shape_cast %41 : vector<1x16x16x4xf32> to vector<16x16x4xf32>
    %c1_46 = arith.constant 1 : index
    %c2_47 = arith.constant 2 : index
    %c0_48 = arith.constant 0 : index
    %c0_49 = arith.constant 0 : index
    %43 = vector.load %arg2[%c1_46, %c2_47, %c0_48, %c0_49] : memref<3x3x4x8xf32, #tpu.memory_space<vmem>>, vector<1x1x4x8xf32>
    %44 = vector.shape_cast %43 : vector<1x1x4x8xf32> to vector<4x8xf32>
    %45 = vector.shape_cast %44 : vector<4x8xf32> to vector<1x4x8xf32>
    %46 = vector.broadcast %45 : vector<1x4x8xf32> to vector<16x4x8xf32>
    "tpu.trace_start"() <{level = 10 : i32, message = "hwc,hcd->hwd"}> : () -> ()
    %cst_50 = arith.constant dense<0.000000e+00> : vector<16x16x8xf32>
    %47 = tpu.matmul %42, %46, %cst_50 {dimension_numbers = #tpu.dot_dimension_numbers<[2], [1], [1], [2], [0, 0, 0, 1, 1, 2], [0], [0]>} : vector<16x16x4xf32>, vector<16x4x8xf32>, vector<16x16x8xf32> -> vector<16x16x8xf32>
    "tpu.trace_stop"() : () -> ()
    %48 = arith.addf %40, %47 : vector<16x16x8xf32>
    %c0_51 = arith.constant 0 : index
    %c2_52 = arith.constant 2 : index
    %c0_53 = arith.constant 0 : index
    %c0_54 = arith.constant 0 : index
    %49 = vector.load %arg1[%c0_51, %c2_52, %c0_53, %c0_54] : memref<1x18x18x4xf32, #tpu.memory_space<vmem>>, vector<1x16x16x4xf32>
    %50 = vector.shape_cast %49 : vector<1x16x16x4xf32> to vector<16x16x4xf32>
    %c2_55 = arith.constant 2 : index
    %c0_56 = arith.constant 0 : index
    %c0_57 = arith.constant 0 : index
    %c0_58 = arith.constant 0 : index
    %51 = vector.load %arg2[%c2_55, %c0_56, %c0_57, %c0_58] : memref<3x3x4x8xf32, #tpu.memory_space<vmem>>, vector<1x1x4x8xf32>
    %52 = vector.shape_cast %51 : vector<1x1x4x8xf32> to vector<4x8xf32>
    %53 = vector.shape_cast %52 : vector<4x8xf32> to vector<1x4x8xf32>
    %54 = vector.broadcast %53 : vector<1x4x8xf32> to vector<16x4x8xf32>
    "tpu.trace_start"() <{level = 10 : i32, message = "hwc,hcd->hwd"}> : () -> ()
    %cst_59 = arith.constant dense<0.000000e+00> : vector<16x16x8xf32>
    %55 = tpu.matmul %50, %54, %cst_59 {dimension_numbers = #tpu.dot_dimension_numbers<[2], [1], [1], [2], [0, 0, 0, 1, 1, 2], [0], [0]>} : vector<16x16x4xf32>, vector<16x4x8xf32>, vector<16x16x8xf32> -> vector<16x16x8xf32>
    "tpu.trace_stop"() : () -> ()
    %56 = arith.addf %48, %55 : vector<16x16x8xf32>
    %c0_60 = arith.constant 0 : index
    %c2_61 = arith.constant 2 : index
    %c1_62 = arith.constant 1 : index
    %c0_63 = arith.constant 0 : index
    %57 = vector.load %arg1[%c0_60, %c2_61, %c1_62, %c0_63] : memref<1x18x18x4xf32, #tpu.memory_space<vmem>>, vector<1x16x16x4xf32>
    %58 = vector.shape_cast %57 : vector<1x16x16x4xf32> to vector<16x16x4xf32>
    %c2_64 = arith.constant 2 : index
    %c1_65 = arith.constant 1 : index
    %c0_66 = arith.constant 0 : index
    %c0_67 = arith.constant 0 : index
    %59 = vector.load %arg2[%c2_64, %c1_65, %c0_66, %c0_67] : memref<3x3x4x8xf32, #tpu.memory_space<vmem>>, vector<1x1x4x8xf32>
    %60 = vector.shape_cast %59 : vector<1x1x4x8xf32> to vector<4x8xf32>
    %61 = vector.shape_cast %60 : vector<4x8xf32> to vector<1x4x8xf32>
    %62 = vector.broadcast %61 : vector<1x4x8xf32> to vector<16x4x8xf32>
    "tpu.trace_start"() <{level = 10 : i32, message = "hwc,hcd->hwd"}> : () -> ()
    %cst_68 = arith.constant dense<0.000000e+00> : vector<16x16x8xf32>
    %63 = tpu.matmul %58, %62, %cst_68 {dimension_numbers = #tpu.dot_dimension_numbers<[2], [1], [1], [2], [0, 0, 0, 1, 1, 2], [0], [0]>} : vector<16x16x4xf32>, vector<16x4x8xf32>, vector<16x16x8xf32> -> vector<16x16x8xf32>
    "tpu.trace_stop"() : () -> ()
    %64 = arith.addf %56, %63 : vector<16x16x8xf32>
    %c0_69 = arith.constant 0 : index
    %c2_70 = arith.constant 2 : index
    %c2_71 = arith.constant 2 : index
    %c0_72 = arith.constant 0 : index
    %65 = vector.load %arg1[%c0_69, %c2_70, %c2_71, %c0_72] : memref<1x18x18x4xf32, #tpu.memory_space<vmem>>, vector<1x16x16x4xf32>
    %66 = vector.shape_cast %65 : vector<1x16x16x4xf32> to vector<16x16x4xf32>
    %c2_73 = arith.constant 2 : index
    %c2_74 = arith.constant 2 : index
    %c0_75 = arith.constant 0 : index
    %c0_76 = arith.constant 0 : index
    %67 = vector.load %arg2[%c2_73, %c2_74, %c0_75, %c0_76] : memref<3x3x4x8xf32, #tpu.memory_space<vmem>>, vector<1x1x4x8xf32>
    %68 = vector.shape_cast %67 : vector<1x1x4x8xf32> to vector<4x8xf32>
    %69 = vector.shape_cast %68 : vector<4x8xf32> to vector<1x4x8xf32>
    %70 = vector.broadcast %69 : vector<1x4x8xf32> to vector<16x4x8xf32>
    "tpu.trace_start"() <{level = 10 : i32, message = "hwc,hcd->hwd"}> : () -> ()
    %cst_77 = arith.constant dense<0.000000e+00> : vector<16x16x8xf32>
    %71 = tpu.matmul %66, %70, %cst_77 {dimension_numbers = #tpu.dot_dimension_numbers<[2], [1], [1], [2], [0, 0, 0, 1, 1, 2], [0], [0]>} : vector<16x16x4xf32>, vector<16x4x8xf32>, vector<16x16x8xf32> -> vector<16x16x8xf32>
    "tpu.trace_stop"() : () -> ()
    %72 = arith.addf %64, %71 : vector<16x16x8xf32>
    %c0_78 = arith.constant 0 : index
    %c0_79 = arith.constant 0 : index
    %73 = vector.load %arg3[%c0_78, %c0_79] : memref<1x8xf32, #tpu.memory_space<vmem>>, vector<1x8xf32>
    %74 = vector.shape_cast %73 : vector<1x8xf32> to vector<1x1x8xf32>
    %75 = vector.broadcast %74 : vector<1x1x8xf32> to vector<16x16x8xf32>
    %76 = arith.addf %72, %75 : vector<16x16x8xf32>
    %c0_80 = arith.constant 0 : index
    %c0_81 = arith.constant 0 : index
    %c0_82 = arith.constant 0 : index
    %c0_83 = arith.constant 0 : index
    %77 = vector.load %arg4[%c0_80, %c0_81, %c0_82, %c0_83] : memref<1x16x16x8xf32, #tpu.memory_space<vmem>>, vector<1x16x16x8xf32>
    %78 = vector.shape_cast %77 : vector<1x16x16x8xf32> to vector<16x16x8xf32>
    %79 = vector.shape_cast %76 : vector<16x16x8xf32> to vector<1x16x16x8xf32>
    tpu.vector_store %arg4[%c0_80, %c0_81, %c0_82, %c0_83], %79 {strides = array<i32>} : memref<1x16x16x8xf32, #tpu.memory_space<vmem>>, vector<1x16x16x8xf32>,
    return
  }
  func.func @transform_0(%arg0: i32) -> (i32, i32, i32, i32) {
    %c0_i32 = arith.constant 0 : i32
    %c0_i32_0 = arith.constant 0 : i32
    %c0_i32_1 = arith.constant 0 : i32
    %c0_i32_2 = arith.constant 0 : i32
    return %arg0, %c0_i32, %c0_i32_0, %c0_i32_1 : i32, i32, i32, i32
  }
  func.func @transform_1(%arg0: i32) -> (i32, i32, i32, i32) {
    %c0_i32 = arith.constant 0 : i32
    %c0_i32_0 = arith.constant 0 : i32
    %c0_i32_1 = arith.constant 0 : i32
    %c0_i32_2 = arith.constant 0 : i32
    %c0_i32_3 = arith.constant 0 : i32
    return %c0_i32, %c0_i32_0, %c0_i32_1, %c0_i32_2 : i32, i32, i32, i32
  }
  func.func @transform_2(%arg0: i32) -> (i32, i32) {
    %c0_i32 = arith.constant 0 : i32
    %c0_i32_0 = arith.constant 0 : i32
    %c0_i32_1 = arith.constant 0 : i32
    return %c0_i32, %c0_i32_0 : i32, i32
  }
  func.func @transform_3(%arg0: i32) -> (i32, i32, i32, i32) {
    %c0_i32 = arith.constant 0 : i32
    %c0_i32_0 = arith.constant 0 : i32
    %c0_i32_1 = arith.constant 0 : i32
    %c0_i32_2 = arith.constant 0 : i32
    return %arg0, %c0_i32, %c0_i32_0, %c0_i32_1 : i32, i32, i32, i32
  }
}

</mosaic_0001>

<bundles_post_ra>
// kernel: _conv2d_ssp_impl.1
= control target key start
LH: loop header
LB: loop body
LE: loop exit
PB: predicated region body
PF: predicated region fallthrough
CT: control target
= control target key end

     0   :  { %s14611_s12 = smov 0   ;;  %s16222_s0 = inlined_call_operand.vmem [shape: f32[2,18,18,4], index: 0, kind: input, shape index: {}]   ;;  %s16223_s1 = inlined_call_operand.vmem [shape: f32[3,3,4,8], index: 1, kind: input, shape index: {}]   ;;  %s16224_s2 = inlined_call_operand.vmem [shape: f32[1,8], index: 2, kind: input, shape index: {}]   ;;  %s16225_s3 = inlined_call_operand.vmem [shape: f32[2,16,16,8], index: 3, kind: output, shape index: {}]  }
   0x1 LB: > { %s12522_s13 = sadd.s32 4294967295, %s14589_s12   ;;  %p12526_p0 = scmp.ge.s32.totalorder %s14589_s12, 1  ;;  %s14589_s12 = sphi %s14611_s12, %s13_s12  }
   0x2   : > { %p137_p1 = scmp.lt.s32.totalorder %s14589_s12, 3 }
   0x4   : > { %p138_p2 = pnand %p12526_p0, %p137_p1 }
   0x6   : > { %141 = sbr.rel (%p138_p2) target bundleno = 521 (0x209), region = 32 }
   0xd   : > { %v14622_v0 = vld [vmem:[%s16223_s1 + $0x4] sm:$0xf]  ;;  %vm245_vm0 = vcmask 1043456   ;;  %p161_p3 = scmp.lt.s32.totalorder %s12522_s13, 1  ;;  %vm238_vm1 = vcmask 31744   ;;  %vm12434_vm2 = vcmask 64512  }
   0xe   : > { %13598 = vmatprep.subr.msk.mxu0 %vm245_vm0, %v14622_v0  ;;  %13603 = vmatprep.subr.msk.mxu1 %vm245_vm0, %v14622_v0  ;;  %v14835_v31 = vld [vmem:[%s16223_s1] sm:$0xf] }
   0xf   : > { %13599 = vmatpush3.msk.msra.mxu0 %vm245_vm0, %v14622_v0  ;;  %13604 = vmatpush3.msk.msra.mxu1 %vm245_vm0, %v14622_v0  ;;  %s16311_s13 = smov (!%p161_p3, %s12522_s13), 1 }
  0x10   : > { %13608 = vmatprep.subr.msk.mxu0 %vm245_vm0, %v14622_v0  ;;  %13613 = vmatprep.subr.msk.mxu1 %vm245_vm0, %v14622_v0  ;;  %s14574_s16 = smul.u32 432, %s16311_s13  ;;  %s13165_s9 = sshll.u32 %s16311_s13, 8 }
  0x12   : > { %s14642_s19 = scalar_lea.vmem %s16222_s0, %s14574_s16  ;;  %s16121_s16 = scalar_lea.vmem %s16225_s3, %s13165_s9 }
  0x13   : > { %v204_v1 = vld [vmem:[%s14642_s19 + $0x1] sm:$0xff]  ;;  %v14646_v2 = vld [vmem:[%s14642_s19 + $0x19] sm:$0xff]  ;;  %v205_v3 = vld [vmem:[%s14642_s19 + $0x9] sm:$0xff] }
  0x14   : > { %13600 = vmatprep.mubr.msk.f32.mxu0 %vm238_vm1, %v204_v1  ;;  %13605 = vmatprep.mubr.msk.f32.mxu1 %vm238_vm1, %v14646_v2  ;;  %v14653_v4 = vld [vmem:[%s14642_s19 + $0x21] sm:$0xff]  ;;  %v14656_v5 = vld [vmem:[%s14642_s19 + $0x31] sm:$0xff]  ;;  %v14659_v6 = vld [vmem:[%s14642_s19 + $0x49] sm:$0xff] }
  0x15   : > { %13601 = vmatmul.mubr.msk.f32.vlgmr.msra.gmra.mrb[0].mxu0 %vm238_vm1, %v205_v3  ;;  %13606 = vmatmul.mubr.msk.f32.vlgmr.msra.gmra.mrb[0].mxu1 %vm238_vm1, %v14653_v4  ;;  %v14669_v7 = vld [vmem:[%s14642_s19 + $0x39] sm:$0xff]  ;;  %v14672_v8 = vld [vmem:[%s14642_s19 + $0x51] sm:$0xff]  ;;  %v14683_v9 = vld [vmem:[%s14642_s19 + $0x61] sm:$0xff] }
  0x16   : > { %13609 = vmatpush3.msk.msra.mxu0 %vm245_vm0, %v14622_v0  ;;  %13614 = vmatpush3.msk.msra.mxu1 %vm245_vm0, %v14622_v0  ;;  %v14686_v10 = vld [vmem:[%s14642_s19 + $0x79] sm:$0xff]  ;;  %v14697_v11 = vld [vmem:[%s14642_s19 + $0x69] sm:$0xff]  ;;  %v14700_v12 = vld [vmem:[%s14642_s19 + $0x81] sm:$0xff] }
  0x17   : > { %13610 = vmatprep.mubr.msk.f32.mxu0 %vm238_vm1, %v14656_v5  ;;  %13615 = vmatprep.mubr.msk.f32.mxu1 %vm238_vm1, %v14659_v6  ;;  %v14711_v13 = vld [vmem:[%s14642_s19 + $0x91] sm:$0xff]  ;;  %v14714_v14 = vld [vmem:[%s14642_s19 + $0xa9] sm:$0xff]  ;;  %v14725_v15 = vld [vmem:[%s14642_s19 + $0x99] sm:$0xff] }
  0x18   : > { %13618 = vmatprep.subr.msk.mxu0 %vm245_vm0, %v14622_v0  ;;  %13623 = vmatprep.subr.msk.mxu1 %vm245_vm0, %v14622_v0  ;;  %v14728_v16 = vld [vmem:[%s14642_s19 + $0xb1] sm:$0xff]  ;;  %v14739_v17 = vld [vmem:[%s14642_s19 + $0xc1] sm:$0xff]  ;;  %v14742_v18 = vld [vmem:[%s14642_s19 + $0xd9] sm:$0xff] }
  0x19   : > { %13611 = vmatmul.mubr.msk.f32.vlgmr.msra.gmra.mrb[2].mxu0 %vm238_vm1, %v14669_v7  ;;  %13616 = vmatmul.mubr.msk.f32.vlgmr.msra.gmra.mrb[2].mxu1 %vm238_vm1, %v14672_v8  ;;  %v14753_v19 = vld [vmem:[%s14642_s19 + $0xc9] sm:$0xff]  ;;  %v14756_v20 = vld [vmem:[%s14642_s19 + $0xe1] sm:$0xff]  ;;  %v14767_v21 = vld [vmem:[%s14642_s19 + $0xf1] sm:$0xff] }
  0x1a   : > { %13619 = vmatpush3.msk.msra.mxu0 %vm245_vm0, %v14622_v0  ;;  %13624 = vmatpush3.msk.msra.mxu1 %vm245_vm0, %v14622_v0  ;;  %v14770_v22 = vld [vmem:[%s14642_s19 + $0x109] sm:$0xff]  ;;  %v14781_v23 = vld [vmem:[%s14642_s19 + $0xf9] sm:$0xff]  ;;  %v14784_v24 = vld [vmem:[%s14642_s19 + $0x111] sm:$0xff] }
  0x1b   : > { %13620 = vmatprep.mubr.msk.f32.mxu0 %vm238_vm1, %v14683_v9  ;;  %13625 = vmatprep.mubr.msk.f32.mxu1 %vm238_vm1, %v14686_v10  ;;  %v14795_v25 = vld [vmem:[%s14642_s19 + $0x121] sm:$0xff]  ;;  %v14798_v26 = vld [vmem:[%s14642_s19 + $0x139] sm:$0xff]  ;;  %v14809_v27 = vld [vmem:[%s14642_s19 + $0x129] sm:$0xff] }
  0x1c   : > { %13628 = vmatprep.subr.msk.mxu0 %vm245_vm0, %v14622_v0  ;;  %13633 = vmatprep.subr.msk.mxu1 %vm245_vm0, %v14622_v0  ;;  %v14812_v28 = vld [vmem:[%s14642_s19 + $0x141] sm:$0xff]  ;;  %v14823_v29 = vld [vmem:[%s14642_s19 + $0x151] sm:$0xff]  ;;  %v14826_v30 = vld [vmem:[%s14642_s19 + $0x169] sm:$0xff] }
  0x1d   : > { %13621 = vmatmul.mubr.msk.f32.vlgmr.msra.gmra.mrb[4].mxu0 %vm238_vm1, %v14697_v11  ;;  %13626 = vmatmul.mubr.msk.f32.vlgmr.msra.gmra.mrb[4].mxu1 %vm238_vm1, %v14700_v12  ;;  %16254 = vst [vmem:[#allocation2_spill] sm:$0xff] %v14812_v28  ;;  %16255 = vst [vmem:[#allocation3_spill] sm:$0xff] %v14826_v30  ;;  %v14842_v32 = vld [vmem:[%s14642_s19 + $0x159] sm:$0xff]  ;;  %v14845_v33 = vld [vmem:[%s14642_s19 + $0x171] sm:$0xff] }
  0x1e   : > { %13629 = vmatpush3.msk.msra.mxu0 %vm245_vm0, %v14622_v0  ;;  %13634 = vmatpush3.msk.msra.mxu1 %vm245_vm0, %v14622_v0  ;;  %16256 = vst [vmem:[#allocation4_spill] sm:$0xff] %v14842_v32  ;;  %16257 = vst [vmem:[#allocation5_spill] sm:$0xff] %v14845_v33  ;;  %v171_v34 = vld [vmem:[%s14642_s19] sm:$0xff]  ;;  %v14857_v35 = vld [vmem:[%s14642_s19 + $0x18] sm:$0xff] }
  0x1f   : > { %13630 = vmatprep.mubr.msk.f32.mxu0 %vm238_vm1, %v14711_v13  ;;  %13635 = vmatprep.mubr.msk.f32.mxu1 %vm238_vm1, %v14714_v14  ;;  %v172_v36 = vld [vmem:[%s14642_s19 + $0x8] sm:$0xff]  ;;  %v14869_v37 = vld [vmem:[%s14642_s19 + $0x20] sm:$0xff]  ;;  %v14879_v38 = vld [vmem:[%s14642_s19 + $0x30] sm:$0xff] }
  0x20   : > { %13638 = vmatprep.subr.msk.mxu0 %vm245_vm0, %v14622_v0  ;;  %13643 = vmatprep.subr.msk.mxu1 %vm245_vm0, %v14622_v0  ;;  %v14882_v39 = vld [vmem:[%s14642_s19 + $0x48] sm:$0xff]  ;;  %v14892_v40 = vld [vmem:[%s14642_s19 + $0x38] sm:$0xff]  ;;  %v14895_v41 = vld [vmem:[%s14642_s19 + $0x50] sm:$0xff] }
  0x21   : > { %13631 = vmatmul.mubr.msk.f32.vlgmr.msra.gmra.mrb[6].mxu0 %vm238_vm1, %v14725_v15  ;;  %13636 = vmatmul.mubr.msk.f32.vlgmr.msra.gmra.mrb[6].mxu1 %vm238_vm1, %v14728_v16  ;;  %v14906_v42 = vld [vmem:[%s14642_s19 + $0x60] sm:$0xff]  ;;  %v14909_v43 = vld [vmem:[%s14642_s19 + $0x78] sm:$0xff]  ;;  %v14920_v44 = vld [vmem:[%s14642_s19 + $0x68] sm:$0xff] }
  0x22   : > { %13639 = vmatpush3.msk.msra.mxu0 %vm245_vm0, %v14622_v0  ;;  %13644 = vmatpush3.msk.msra.mxu1 %vm245_vm0, %v14622_v0  ;;  %v14923_v45 = vld [vmem:[%s14642_s19 + $0x80] sm:$0xff]  ;;  %v14934_v46 = vld [vmem:[%s14642_s19 + $0x90] sm:$0xff]  ;;  %v14937_v47 = vld [vmem:[%s14642_s19 + $0xa8] sm:$0xff] }
  0x23   : > { %13640 = vmatprep.mubr.msk.f32.mxu0 %vm238_vm1, %v14739_v17  ;;  %13645 = vmatprep.mubr.msk.f32.mxu1 %vm238_vm1, %v14742_v18  ;;  %v14948_v48 = vld [vmem:[%s14642_s19 + $0x98] sm:$0xff]  ;;  %v14951_v49 = vld [vmem:[%s14642_s19 + $0xb0] sm:$0xff]  ;;  %v14962_v50 = vld [vmem:[%s14642_s19 + $0xc0] sm:$0xff] }
  0x24   : > { %13648 = vmatprep.subr.msk.mxu0 %vm245_vm0, %v14622_v0  ;;  %13653 = vmatprep.subr.msk.mxu1 %vm245_vm0, %v14622_v0  ;;  %v14965_v51 = vld [vmem:[%s14642_s19 + $0xd8] sm:$0xff]  ;;  %v14976_v52 = vld [vmem:[%s14642_s19 + $0xc8] sm:$0xff]  ;;  %v14979_v53 = vld [vmem:[%s14642_s19 + $0xe0] sm:$0xff] }
  0x25   : > { %13641 = vmatmul.mubr.msk.f32.vlgmr.msra.gmra.mrb[8].mxu0 %vm238_vm1, %v14753_v19  ;;  %13646 = vmatmul.mubr.msk.f32.vlgmr.msra.gmra.mrb[8].mxu1 %vm238_vm1, %v14756_v20  ;;  %v14990_v54 = vld [vmem:[%s14642_s19 + $0xf0] sm:$0xff]  ;;  %v14993_v55 = vld [vmem:[%s14642_s19 + $0x108] sm:$0xff]  ;;  %v15004_v56 = vld [vmem:[%s14642_s19 + $0xf8] sm:$0xff] }
  0x26   : > { %13649 = vmatpush3.msk.msra.mxu0 %vm245_vm0, %v14622_v0  ;;  %13654 = vmatpush3.msk.msra.mxu1 %vm245_vm0, %v14622_v0  ;;  %v15007_v57 = vld [vmem:[%s14642_s19 + $0x110] sm:$0xff]  ;;  %v15018_v58 = vld [vmem:[%s14642_s19 + $0x120] sm:$0xff]  ;;  %v15021_v59 = vld [vmem:[%s14642_s19 + $0x138] sm:$0xff] }
  0x27   : > { %13650 = vmatprep.mubr.msk.f32.mxu0 %vm238_vm1, %v14767_v21  ;;  %13655 = vmatprep.mubr.msk.f32.mxu1 %vm238_vm1, %v14770_v22  ;;  %v15032_v60 = vld [vmem:[%s14642_s19 + $0x128] sm:$0xff]  ;;  %v15035_v61 = vld [vmem:[%s14642_s19 + $0x140] sm:$0xff]  ;;  %v15046_v62 = vld [vmem:[%s14642_s19 + $0x150] sm:$0xff] }
  0x28   : > { %13658 = vmatprep.subr.msk.mxu0 %vm245_vm0, %v14622_v0  ;;  %13663 = vmatprep.subr.msk.mxu1 %vm245_vm0, %v14622_v0  ;;  %v15049_v63 = vld [vmem:[%s14642_s19 + $0x168] sm:$0xff]  ;;  %v15065_v1 = vld [vmem:[%s14642_s19 + $0x158] sm:$0xff]  ;;  %v15068_v3 = vld [vmem:[%s14642_s19 + $0x170] sm:$0xff] }
  0x29   : > { %13651 = vmatmul.mubr.msk.f32.vlgmr.msra.gmra.mrb[10].mxu0 %vm238_vm1, %v14781_v23  ;;  %13656 = vmatmul.mubr.msk.f32.vlgmr.msra.gmra.mrb[10].mxu1 %vm238_vm1, %v14784_v24 }
  0x2a   : > { %13659 = vmatpush3.msk.msra.mxu0 %vm245_vm0, %v14622_v0  ;;  %13664 = vmatpush3.msk.msra.mxu1 %vm245_vm0, %v14622_v0 }
  0x2b   : > { %13660 = vmatprep.mubr.msk.f32.mxu0 %vm238_vm1, %v14795_v25  ;;  %13665 = vmatprep.mubr.msk.f32.mxu1 %vm238_vm1, %v14798_v26 }
  0x2c   : > { %13668 = vmatprep.subr.msk.mxu0 %vm245_vm0, %v14622_v0  ;;  %13673 = vmatprep.subr.msk.mxu1 %vm245_vm0, %v14622_v0 }
  0x2d   : > { %13661 = vmatmul.mubr.msk.f32.vlgmr.msra.gmra.mrb[12].mxu0 %vm238_vm1, %v14809_v27  ;;  %13666 = vmatmul.mubr.msk.f32.vlgmr.msra.gmra.mrb[12].mxu1 %vm238_vm1, %v14812_v28  ;;  %v15291_v28 = vld [vmem:[%s14642_s19 + $0x172] sm:$0xff] }
  0x2e   : > { %13669 = vmatpush3.msk.msra.mxu0 %vm245_vm0, %v14622_v0  ;;  %13674 = vmatpush3.msk.msra.mxu1 %vm245_vm0, %v14622_v0  ;;  %v15058_v0 = vld [vmem:[%s16223_s1 + $0x8] sm:$0xf] }
  0x2f   : > { %13670 = vmatprep.mubr.msk.f32.mxu0 %vm238_vm1, %v14823_v29  ;;  %13675 = vmatprep.mubr.msk.f32.mxu1 %vm238_vm1, %v14826_v30  ;;  %v15102_v30 = vld [vmem:[%s14642_s19 + $0x32] sm:$0xff] }
  0x30   : > { %13678 = vmatprep.subr.msk.mxu0 %vm245_vm0, %v14835_v31  ;;  %13683 = vmatprep.subr.msk.mxu1 %vm245_vm0, %v14835_v31  ;;  %16260 = vst [vmem:[#allocation8_spill] sm:$0xff] %v15102_v30 }
  0x31   : > { %13671 = vmatmul.mubr.msk.f32.vlgmr.msra.gmra.mrb[14].mxu0 %vm238_vm1, %v14842_v32  ;;  %13676 = vmatmul.mubr.msk.f32.vlgmr.msra.gmra.mrb[14].mxu1 %vm238_vm1, %v14845_v33  ;;  %v15092_v33 = vld [vmem:[%s14642_s19 + $0x22] sm:$0xff]  ;;  %v15105_v32 = vld [vmem:[%s14642_s19 + $0x4a] sm:$0xff] }
  0x32   : > { %13679 = vmatpush3.msk.msra.mxu0 %vm245_vm0, %v14835_v31  ;;  %13684 = vmatpush3.msk.msra.mxu1 %vm245_vm0, %v14835_v31  ;;  %16259 = vst [vmem:[#allocation7_spill] sm:$0xff] %v15092_v33  ;;  %16261 = vst [vmem:[#allocation9_spill] sm:$0xff] %v15105_v32 }
  0x33   : > { %13680 = vmatprep.mubr.msk.f32.mxu0 %vm238_vm1, %v171_v34  ;;  %13685 = vmatprep.mubr.msk.f32.mxu1 %vm238_vm1, %v14857_v35  ;;  %v2838_v34 = vld [vmem:[%s14642_s19 + $0x2] sm:$0xff] }
  0x34   : > { %13688 = vmatprep.subr.msk.mxu0 %vm245_vm0, %v14835_v31  ;;  %13693 = vmatprep.subr.msk.mxu1 %vm245_vm0, %v14835_v31 }
  0x35   : > { %13681 = vmatmul.mubr.msk.f32.vlgmr.msra.gmra.mrb[0].mxu0 %vm238_vm1, %v172_v36  ;;  %13686 = vmatmul.mubr.msk.f32.vlgmr.msra.gmra.mrb[0].mxu1 %vm238_vm1, %v14869_v37  ;;  %v2839_v36 = vld [vmem:[%s14642_s19 + $0xa] sm:$0xff] }
  0x36   : > { %13689 = vmatpush3.msk.msra.mxu0 %vm245_vm0, %v14835_v31  ;;  %13694 = vmatpush3.msk.msra.mxu1 %vm245_vm0, %v14835_v31 }
  0x37   : > { %13690 = vmatprep.mubr.msk.f32.mxu0 %vm238_vm1, %v14879_v38  ;;  %13695 = vmatprep.mubr.msk.f32.mxu1 %vm238_vm1, %v14882_v39 }
  0x38   : > { %13698 = vmatprep.subr.msk.mxu0 %vm245_vm0, %v14835_v31  ;;  %13703 = vmatprep.subr.msk.mxu1 %vm245_vm0, %v14835_v31 }
  0x39   : > { %13691 = vmatmul.mubr.msk.f32.vlgmr.msra.gmra.mrb[2].mxu0 %vm238_vm1, %v14892_v40  ;;  %13696 = vmatmul.mubr.msk.f32.vlgmr.msra.gmra.mrb[2].mxu1 %vm238_vm1, %v14895_v41 }
  0x3a   : > { %13699 = vmatpush3.msk.msra.mxu0 %vm245_vm0, %v14835_v31  ;;  %13704 = vmatpush3.msk.msra.mxu1 %vm245_vm0, %v14835_v31 }
  0x3b   : > { %13700 = vmatprep.mubr.msk.f32.mxu0 %vm238_vm1, %v14906_v42  ;;  %13705 = vmatprep.mubr.msk.f32.mxu1 %vm238_vm1, %v14909_v43 }
  0x3c   : > { %13708 = vmatprep.subr.msk.mxu0 %vm245_vm0, %v14835_v31  ;;  %13713 = vmatprep.subr.msk.mxu1 %vm245_vm0, %v14835_v31 }
  0x3d   : > { %13701 = vmatmul.mubr.msk.f32.vlgmr.msra.gmra.mrb[4].mxu0 %vm238_vm1, %v14920_v44  ;;  %13706 = vmatmul.mubr.msk.f32.vlgmr.msra.gmra.mrb[4].mxu1 %vm238_vm1, %v14923_v45 }
  0x3e   : > { %13709 = vmatpush3.msk.msra.mxu0 %vm245_vm0, %v14835_v31  ;;  %13714 = vmatpush3.msk.msra.mxu1 %vm245_vm0, %v14835_v31 }
  0x3f   : > { %13710 = vmatprep.mubr.msk.f32.mxu0 %vm238_vm1, %v14934_v46  ;;  %13715 = vmatprep.mubr.msk.f32.mxu1 %vm238_vm1, %v14937_v47 }
  0x40   : > { %13718 = vmatprep.subr.msk.mxu0 %vm245_vm0, %v14835_v31  ;;  %13723 = vmatprep.subr.msk.mxu1 %vm245_vm0, %v14835_v31 }
  0x41   : > { %13711 = vmatmul.mubr.msk.f32.vlgmr.msra.gmra.mrb[6].mxu0 %vm238_vm1, %v14948_v48  ;;  %13716 = vmatmul.mubr.msk.f32.vlgmr.msra.gmra.mrb[6].mxu1 %vm238_vm1, %v14951_v49 }
  0x42   : > { %13719 = vmatpush3.msk.msra.mxu0 %vm245_vm0, %v14835_v31  ;;  %13724 = vmatpush3.msk.msra.mxu1 %vm245_vm0, %v14835_v31 }
  0x43   : > { %13720 = vmatprep.mubr.msk.f32.mxu0 %vm238_vm1, %v14962_v50  ;;  %13725 = vmatprep.mubr.msk.f32.mxu1 %vm238_vm1, %v14965_v51 }
  0x44   : > { %13728 = vmatprep.subr.msk.mxu0 %vm245_vm0, %v14835_v31  ;;  %13733 = vmatprep.subr.msk.mxu1 %vm245_vm0, %v14835_v31 }
  0x45   : > { %13721 = vmatmul.mubr.msk.f32.vlgmr.msra.gmra.mrb[8].mxu0 %vm238_vm1, %v14976_v52  ;;  %13726 = vmatmul.mubr.msk.f32.vlgmr.msra.gmra.mrb[8].mxu1 %vm238_vm1, %v14979_v53 }
  0x46   : > { %13729 = vmatpush3.msk.msra.mxu0 %vm245_vm0, %v14835_v31  ;;  %13734 = vmatpush3.msk.msra.mxu1 %vm245_vm0, %v14835_v31 }
  0x47   : > { %13730 = vmatprep.mubr.msk.f32.mxu0 %vm238_vm1, %v14990_v54  ;;  %13735 = vmatprep.mubr.msk.f32.mxu1 %vm238_vm1, %v14993_v55 }
  0x48   : > { %13738 = vmatprep.subr.msk.mxu0 %vm245_vm0, %v14835_v31  ;;  %13743 = vmatprep.subr.msk.mxu1 %vm245_vm0, %v14835_v31 }
  0x49   : > { %13731 = vmatmul.mubr.msk.f32.vlgmr.msra.gmra.mrb[10].mxu0 %vm238_vm1, %v15004_v56  ;;  %13736 = vmatmul.mubr.msk.f32.vlgmr.msra.gmra.mrb[10].mxu1 %vm238_vm1, %v15007_v57 }
  0x4a   : > { %13739 = vmatpush3.msk.msra.mxu0 %vm245_vm0, %v14835_v31  ;;  %13744 = vmatpush3.msk.msra.mxu1 %vm245_vm0, %v14835_v31 }
  0x4b   : > { %13740 = vmatprep.mubr.msk.f32.mxu0 %vm238_vm1, %v15018_v58  ;;  %13745 = vmatprep.mubr.msk.f32.mxu1 %vm238_vm1, %v15021_v59 }
  0x4c   : > { %13748 = vmatprep.subr.msk.mxu0 %vm245_vm0, %v14835_v31  ;;  %13753 = vmatprep.subr.msk.mxu1 %vm245_vm0, %v14835_v31 }
  0x4d   : > { %13741 = vmatmul.mubr.msk.f32.vlgmr.msra.gmra.mrb[12].mxu0 %vm238_vm1, %v15032_v60  ;;  %13746 = vmatmul.mubr.msk.f32.vlgmr.msra.gmra.mrb[12].mxu1 %vm238_vm1, %v15035_v61 }
  0x4e   : > { %13749 = vmatpush3.msk.msra.mxu0 %vm245_vm0, %v14835_v31  ;;  %13754 = vmatpush3.msk.msra.mxu1 %vm245_vm0, %v14835_v31  ;;  %v15080_v31 = vld [vmem:[%s14642_s19 + $0x1a] sm:$0xff] }
  0x4f   : > { %13750 = vmatprep.mubr.msk.f32.mxu0 %vm238_vm1, %v15046_v62  ;;  %13755 = vmatprep.mubr.msk.f32.mxu1 %vm238_vm1, %v15049_v63  ;;  %16258 = vst [vmem:[#allocation6_spill] sm:$0xff] %v15080_v31 }
  0x50   : > { %13758 = vmatprep.subr.msk.mxu0 %vm245_vm0, %v15058_v0  ;;  %13763 = vmatprep.subr.msk.mxu1 %vm245_vm0, %v15058_v0 }
  0x51   : > { %13751 = vmatmul.mubr.msk.f32.vlgmr.msra.gmra.mrb[14].mxu0 %vm238_vm1, %v15065_v1  ;;  %13756 = vmatmul.mubr.msk.f32.vlgmr.msra.gmra.mrb[14].mxu1 %vm238_vm1, %v15068_v3 }
  0x52   : > { %13759 = vmatpush3.msk.msra.mxu0 %vm245_vm0, %v15058_v0  ;;  %13764 = vmatpush3.msk.msra.mxu1 %vm245_vm0, %v15058_v0 }
  0x53   : > { %13760 = vmatprep.mubr.msk.f32.mxu0 %vm238_vm1, %v2838_v34  ;;  %13765 = vmatprep.mubr.msk.f32.mxu1 %vm238_vm1, %v15080_v31  ;;  %v15115_v34 = vld [vmem:[%s14642_s19 + $0x3a] sm:$0xff]  ;;  %v15118_v31 = vld [vmem:[%s14642_s19 + $0x52] sm:$0xff] }
  0x54   : > { %13768 = vmatprep.subr.msk.mxu0 %vm245_vm0, %v15058_v0  ;;  %13773 = vmatprep.subr.msk.mxu1 %vm245_vm0, %v15058_v0  ;;  %16262 = vst [vmem:[#allocation10_spill] sm:$0xff] %v15115_v34  ;;  %16263 = vst [vmem:[#allocation11_spill] sm:$0xff] %v15118_v31 }
  0x55   : > { %13761 = vmatmul.mubr.msk.f32.vlgmr.msra.gmra.mrb[0].mxu0 %vm238_vm1, %v2839_v36  ;;  %13766 = vmatmul.mubr.msk.f32.vlgmr.msra.gmra.mrb[0].mxu1 %vm238_vm1, %v15092_v33  ;;  %v15129_v36 = vld [vmem:[%s14642_s19 + $0x62] sm:$0xff]  ;;  %v15132_v33 = vld [vmem:[%s14642_s19 + $0x7a] sm:$0xff] }
  0x56   : > { %13769 = vmatpush3.msk.msra.mxu0 %vm245_vm0, %v15058_v0  ;;  %13774 = vmatpush3.msk.msra.mxu1 %vm245_vm0, %v15058_v0  ;;  %16264 = vst [vmem:[#allocation12_spill] sm:$0xff] %v15129_v36  ;;  %16265 = vst [vmem:[#allocation13_spill] sm:$0xff] %v15132_v33 }
  0x57   : > { %13770 = vmatprep.mubr.msk.f32.mxu0 %vm238_vm1, %v15102_v30  ;;  %13775 = vmatprep.mubr.msk.f32.mxu1 %vm238_vm1, %v15105_v32  ;;  %v15143_v32 = vld [vmem:[%s14642_s19 + $0x6a] sm:$0xff]  ;;  %v15146_v30 = vld [vmem:[%s14642_s19 + $0x82] sm:$0xff] }
  0x58   : > { %13778 = vmatprep.subr.msk.mxu0 %vm245_vm0, %v15058_v0  ;;  %13783 = vmatprep.subr.msk.mxu1 %vm245_vm0, %v15058_v0  ;;  %16266 = vst [vmem:[#allocation14_spill] sm:$0xff] %v15143_v32  ;;  %16267 = vst [vmem:[#allocation15_spill] sm:$0xff] %v15146_v30 }
  0x59   : > { %13771 = vmatmul.mubr.msk.f32.vlgmr.msra.gmra.mrb[2].mxu0 %vm238_vm1, %v15115_v34  ;;  %13776 = vmatmul.mubr.msk.f32.vlgmr.msra.gmra.mrb[2].mxu1 %vm238_vm1, %v15118_v31  ;;  %v15157_v31 = vld [vmem:[%s14642_s19 + $0x92] sm:$0xff]  ;;  %v15160_v34 = vld [vmem:[%s14642_s19 + $0xaa] sm:$0xff] }
  0x5a   : > { %13779 = vmatpush3.msk.msra.mxu0 %vm245_vm0, %v15058_v0  ;;  %13784 = vmatpush3.msk.msra.mxu1 %vm245_vm0, %v15058_v0  ;;  %16268 = vst [vmem:[#allocation16_spill] sm:$0xff] %v15157_v31  ;;  %16269 = vst [vmem:[#allocation17_spill] sm:$0xff] %v15160_v34 }
  0x5b   : > { %13780 = vmatprep.mubr.msk.f32.mxu0 %vm238_vm1, %v15129_v36  ;;  %13785 = vmatprep.mubr.msk.f32.mxu1 %vm238_vm1, %v15132_v33  ;;  %v15171_v33 = vld [vmem:[%s14642_s19 + $0x9a] sm:$0xff]  ;;  %v15174_v36 = vld [vmem:[%s14642_s19 + $0xb2] sm:$0xff] }
  0x5c   : > { %13788 = vmatprep.subr.msk.mxu0 %vm245_vm0, %v15058_v0  ;;  %13793 = vmatprep.subr.msk.mxu1 %vm245_vm0, %v15058_v0  ;;  %16270 = vst [vmem:[#allocation18_spill] sm:$0xff] %v15171_v33  ;;  %16271 = vst [vmem:[#allocation19_spill] sm:$0xff] %v15174_v36 }
  0x5d   : > { %13781 = vmatmul.mubr.msk.f32.vlgmr.msra.gmra.mrb[4].mxu0 %vm238_vm1, %v15143_v32  ;;  %13786 = vmatmul.mubr.msk.f32.vlgmr.msra.gmra.mrb[4].mxu1 %vm238_vm1, %v15146_v30  ;;  %v15185_v30 = vld [vmem:[%s14642_s19 + $0xc2] sm:$0xff]  ;;  %v15188_v32 = vld [vmem:[%s14642_s19 + $0xda] sm:$0xff] }
  0x5e   : > { %13789 = vmatpush3.msk.msra.mxu0 %vm245_vm0, %v15058_v0  ;;  %13794 = vmatpush3.msk.msra.mxu1 %vm245_vm0, %v15058_v0  ;;  %16272 = vst [vmem:[#allocation20_spill] sm:$0xff] %v15185_v30  ;;  %16273 = vst [vmem:[#allocation21_spill] sm:$0xff] %v15188_v32 }
  0x5f   : > { %13790 = vmatprep.mubr.msk.f32.mxu0 %vm238_vm1, %v15157_v31  ;;  %13795 = vmatprep.mubr.msk.f32.mxu1 %vm238_vm1, %v15160_v34  ;;  %v15199_v34 = vld [vmem:[%s14642_s19 + $0xca] sm:$0xff]  ;;  %v15202_v31 = vld [vmem:[%s14642_s19 + $0xe2] sm:$0xff] }
  0x60   : > { %13798 = vmatprep.subr.msk.mxu0 %vm245_vm0, %v15058_v0  ;;  %13803 = vmatprep.subr.msk.mxu1 %vm245_vm0, %v15058_v0  ;;  %16274 = vst [vmem:[#allocation22_spill] sm:$0xff] %v15199_v34  ;;  %16275 = vst [vmem:[#allocation23_spill] sm:$0xff] %v15202_v31 }
  0x61   : > { %13791 = vmatmul.mubr.msk.f32.vlgmr.msra.gmra.mrb[6].mxu0 %vm238_vm1, %v15171_v33  ;;  %13796 = vmatmul.mubr.msk.f32.vlgmr.msra.gmra.mrb[6].mxu1 %vm238_vm1, %v15174_v36  ;;  %v15213_v36 = vld [vmem:[%s14642_s19 + $0xf2] sm:$0xff]  ;;  %v15216_v33 = vld [vmem:[%s14642_s19 + $0x10a] sm:$0xff] }
  0x62   : > { %13799 = vmatpush3.msk.msra.mxu0 %vm245_vm0, %v15058_v0  ;;  %13804 = vmatpush3.msk.msra.mxu1 %vm245_vm0, %v15058_v0  ;;  %16276 = vst [vmem:[#allocation24_spill] sm:$0xff] %v15213_v36  ;;  %16277 = vst [vmem:[#allocation25_spill] sm:$0xff] %v15216_v33 }
  0x63   : > { %13800 = vmatprep.mubr.msk.f32.mxu0 %vm238_vm1, %v15185_v30  ;;  %13805 = vmatprep.mubr.msk.f32.mxu1 %vm238_vm1, %v15188_v32  ;;  %v15227_v32 = vld [vmem:[%s14642_s19 + $0xfa] sm:$0xff]  ;;  %v15230_v30 = vld [vmem:[%s14642_s19 + $0x112] sm:$0xff] }
  0x64   : > { %13808 = vmatprep.subr.msk.mxu0 %vm245_vm0, %v15058_v0  ;;  %13813 = vmatprep.subr.msk.mxu1 %vm245_vm0, %v15058_v0  ;;  %16278 = vst [vmem:[#allocation26_spill] sm:$0xff] %v15227_v32  ;;  %16279 = vst [vmem:[#allocation27_spill] sm:$0xff] %v15230_v30 }
  0x65   : > { %13801 = vmatmul.mubr.msk.f32.vlgmr.msra.gmra.mrb[8].mxu0 %vm238_vm1, %v15199_v34  ;;  %13806 = vmatmul.mubr.msk.f32.vlgmr.msra.gmra.mrb[8].mxu1 %vm238_vm1, %v15202_v31  ;;  %v15241_v31 = vld [vmem:[%s14642_s19 + $0x122] sm:$0xff]  ;;  %v15244_v34 = vld [vmem:[%s14642_s19 + $0x13a] sm:$0xff] }
  0x66   : > { %13809 = vmatpush3.msk.msra.mxu0 %vm245_vm0, %v15058_v0  ;;  %13814 = vmatpush3.msk.msra.mxu1 %vm245_vm0, %v15058_v0  ;;  %16280 = vst [vmem:[#allocation28_spill] sm:$0xff] %v15241_v31  ;;  %16281 = vst [vmem:[#allocation29_spill] sm:$0xff] %v15244_v34 }
  0x67   : > { %13810 = vmatprep.mubr.msk.f32.mxu0 %vm238_vm1, %v15213_v36  ;;  %13815 = vmatprep.mubr.msk.f32.mxu1 %vm238_vm1, %v15216_v33  ;;  %v15255_v33 = vld [vmem:[%s14642_s19 + $0x12a] sm:$0xff]  ;;  %v15258_v36 = vld [vmem:[%s14642_s19 + $0x142] sm:$0xff] }
  0x68   : > { %13818 = vmatprep.subr.msk.mxu0 %vm245_vm0, %v15058_v0  ;;  %13823 = vmatprep.subr.msk.mxu1 %vm245_vm0, %v15058_v0 }
  0x69   : > { %13811 = vmatmul.mubr.msk.f32.vlgmr.msra.gmra.mrb[10].mxu0 %vm238_vm1, %v15227_v32  ;;  %13816 = vmatmul.mubr.msk.f32.vlgmr.msra.gmra.mrb[10].mxu1 %vm238_vm1, %v15230_v30  ;;  %v15269_v30 = vld [vmem:[%s14642_s19 + $0x152] sm:$0xff]  ;;  %v15272_v32 = vld [vmem:[%s14642_s19 + $0x16a] sm:$0xff] }
  0x6a   : > { %13819 = vmatpush3.msk.msra.mxu0 %vm245_vm0, %v15058_v0  ;;  %13824 = vmatpush3.msk.msra.mxu1 %vm245_vm0, %v15058_v0 }
  0x6b   : > { %13820 = vmatprep.mubr.msk.f32.mxu0 %vm238_vm1, %v15241_v31  ;;  %13825 = vmatprep.mubr.msk.f32.mxu1 %vm238_vm1, %v15244_v34  ;;  %v15281_v34 = vld [vmem:[%s16223_s1 + $0xc] sm:$0xf]  ;;  %v15288_v31 = vld [vmem:[%s14642_s19 + $0x15a] sm:$0xff] }
  0x6c   : > { %13828 = vmatprep.subr.msk.mxu0 %vm245_vm0, %v15058_v0  ;;  %13833 = vmatprep.subr.msk.mxu1 %vm245_vm0, %v15058_v0 }
  0x6d   : > { %13821 = vmatmul.mubr.msk.f32.vlgmr.msra.gmra.mrb[12].mxu0 %vm238_vm1, %v15255_v33  ;;  %13826 = vmatmul.mubr.msk.f32.vlgmr.msra.gmra.mrb[12].mxu1 %vm238_vm1, %v15258_v36 }
  0x6e   : > { %13829 = vmatpush3.msk.msra.mxu0 %vm245_vm0, %v15058_v0  ;;  %13834 = vmatpush3.msk.msra.mxu1 %vm245_vm0, %v15058_v0  ;;  %v15430_v0 = vld [vmem:[%s14642_s19 + $0x188] sm:$0xff] }
  0x6f   : > { %13830 = vmatprep.mubr.msk.f32.mxu0 %vm238_vm1, %v15269_v30  ;;  %13835 = vmatprep.mubr.msk.f32.mxu1 %vm238_vm1, %v15272_v32 }
  0x70   : > { %13838 = vmatprep.subr.msk.mxu0 %vm245_vm0, %v15281_v34  ;;  %13843 = vmatprep.subr.msk.mxu1 %vm245_vm0, %v15281_v34 }
  0x71   : > { %13831 = vmatmul.mubr.msk.f32.vlgmr.msra.gmra.mrb[14].mxu0 %vm238_vm1, %v15288_v31  ;;  %13836 = vmatmul.mubr.msk.f32.vlgmr.msra.gmra.mrb[14].mxu1 %vm238_vm1, %v15291_v28 }
  0x72   : > { %13839 = vmatpush3.msk.msra.mxu0 %vm245_vm0, %v15281_v34  ;;  %13844 = vmatpush3.msk.msra.mxu1 %vm245_vm0, %v15281_v34 }
  0x73   : > { %13840 = vmatprep.mubr.msk.f32.mxu0 %vm238_vm1, %v14857_v35  ;;  %13845 = vmatprep.mubr.msk.f32.mxu1 %vm238_vm1, %v14879_v38  ;;  %v15414_v35 = vld [vmem:[%s14642_s19 + $0x180] sm:$0xff] }
  0x74   : > { %13848 = vmatprep.subr.msk.mxu0 %vm245_vm0, %v15281_v34  ;;  %13853 = vmatprep.subr.msk.mxu1 %vm245_vm0, %v15281_v34 }
  0x75   : > { %13841 = vmatmul.mubr.msk.f32.vlgmr.msra.gmra.mrb[0].mxu0 %vm238_vm1, %v14869_v37  ;;  %13846 = vmatmul.mubr.msk.f32.vlgmr.msra.gmra.mrb[0].mxu1 %vm238_vm1, %v14892_v40  ;;  %v15423_v37 = vld [vmem:[%s16223_s1 + $0x10] sm:$0xf] }
  0x76   : > { %13849 = vmatpush3.msk.msra.mxu0 %vm245_vm0, %v15281_v34  ;;  %13854 = vmatpush3.msk.msra.mxu1 %vm245_vm0, %v15281_v34 }
  0x77   : > { %13850 = vmatprep.mubr.msk.f32.mxu0 %vm238_vm1, %v14882_v39  ;;  %13855 = vmatprep.mubr.msk.f32.mxu1 %vm238_vm1, %v14906_v42 }
  0x78   : > { %13858 = vmatprep.subr.msk.mxu0 %vm245_vm0, %v15281_v34  ;;  %13863 = vmatprep.subr.msk.mxu1 %vm245_vm0, %v15281_v34 }
  0x79   : > { %13851 = vmatmul.mubr.msk.f32.vlgmr.msra.gmra.mrb[2].mxu0 %vm238_vm1, %v14895_v41  ;;  %13856 = vmatmul.mubr.msk.f32.vlgmr.msra.gmra.mrb[2].mxu1 %vm238_vm1, %v14920_v44 }
  0x7a   : > { %13859 = vmatpush3.msk.msra.mxu0 %vm245_vm0, %v15281_v34  ;;  %13864 = vmatpush3.msk.msra.mxu1 %vm245_vm0, %v15281_v34 }
  0x7b   : > { %13860 = vmatprep.mubr.msk.f32.mxu0 %vm238_vm1, %v14909_v43  ;;  %13865 = vmatprep.mubr.msk.f32.mxu1 %vm238_vm1, %v14934_v46 }
  0x7c   : > { %13868 = vmatprep.subr.msk.mxu0 %vm245_vm0, %v15281_v34  ;;  %13873 = vmatprep.subr.msk.mxu1 %vm245_vm0, %v15281_v34 }
  0x7d   : > { %13861 = vmatmul.mubr.msk.f32.vlgmr.msra.gmra.mrb[4].mxu0 %vm238_vm1, %v14923_v45  ;;  %13866 = vmatmul.mubr.msk.f32.vlgmr.msra.gmra.mrb[4].mxu1 %vm238_vm1, %v14948_v48 }
  0x7e   : > { %13869 = vmatpush3.msk.msra.mxu0 %vm245_vm0, %v15281_v34  ;;  %13874 = vmatpush3.msk.msra.mxu1 %vm245_vm0, %v15281_v34 }
  0x7f   : > { %13870 = vmatprep.mubr.msk.f32.mxu0 %vm238_vm1, %v14937_v47  ;;  %13875 = vmatprep.mubr.msk.f32.mxu1 %vm238_vm1, %v14962_v50 }
  0x80   : > { %13878 = vmatprep.subr.msk.mxu0 %vm245_vm0, %v15281_v34  ;;  %13883 = vmatprep.subr.msk.mxu1 %vm245_vm0, %v15281_v34 }
  0x81   : > { %13871 = vmatmul.mubr.msk.f32.vlgmr.msra.gmra.mrb[6].mxu0 %vm238_vm1, %v14951_v49  ;;  %13876 = vmatmul.mubr.msk.f32.vlgmr.msra.gmra.mrb[6].mxu1 %vm238_vm1, %v14976_v52 }
  0x82   : > { %13879 = vmatpush3.msk.msra.mxu0 %vm245_vm0, %v15281_v34  ;;  %13884 = vmatpush3.msk.msra.mxu1 %vm245_vm0, %v15281_v34 }
  0x83   : > { %13880 = vmatprep.mubr.msk.f32.mxu0 %vm238_vm1, %v14965_v51  ;;  %13885 = vmatprep.mubr.msk.f32.mxu1 %vm238_vm1, %v14990_v54 }
  0x84   : > { %13888 = vmatprep.subr.msk.mxu0 %vm245_vm0, %v15281_v34  ;;  %13893 = vmatprep.subr.msk.mxu1 %vm245_vm0, %v15281_v34 }
  0x85   : > { %13881 = vmatmul.mubr.msk.f32.vlgmr.msra.gmra.mrb[8].mxu0 %vm238_vm1, %v14979_v53  ;;  %13886 = vmatmul.mubr.msk.f32.vlgmr.msra.gmra.mrb[8].mxu1 %vm238_vm1, %v15004_v56 }
  0x86   : > { %13889 = vmatpush3.msk.msra.mxu0 %vm245_vm0, %v15281_v34  ;;  %13894 = vmatpush3.msk.msra.mxu1 %vm245_vm0, %v15281_v34 }
  0x87   : > { %13890 = vmatprep.mubr.msk.f32.mxu0 %vm238_vm1, %v14993_v55  ;;  %13895 = vmatprep.mubr.msk.f32.mxu1 %vm238_vm1, %v15018_v58 }
  0x88   : > { %13898 = vmatprep.subr.msk.mxu0 %vm245_vm0, %v15281_v34  ;;  %13903 = vmatprep.subr.msk.mxu1 %vm245_vm0, %v15281_v34 }
  0x89   : > { %13891 = vmatmul.mubr.msk.f32.vlgmr.msra.gmra.mrb[10].mxu0 %vm238_vm1, %v15007_v57  ;;  %13896 = vmatmul.mubr.msk.f32.vlgmr.msra.gmra.mrb[10].mxu1 %vm238_vm1, %v15032_v60 }
  0x8a   : > { %13899 = vmatpush3.msk.msra.mxu0 %vm245_vm0, %v15281_v34  ;;  %13904 = vmatpush3.msk.msra.mxu1 %vm245_vm0, %v15281_v34 }
  0x8b   : > { %13900 = vmatprep.mubr.msk.f32.mxu0 %vm238_vm1, %v15021_v59  ;;  %13905 = vmatprep.mubr.msk.f32.mxu1 %vm238_vm1, %v15046_v62 }
  0x8c   : > { %13908 = vmatprep.subr.msk.mxu0 %vm245_vm0, %v15281_v34  ;;  %13913 = vmatprep.subr.msk.mxu1 %vm245_vm0, %v15281_v34 }
  0x8d   : > { %13901 = vmatmul.mubr.msk.f32.vlgmr.msra.gmra.mrb[12].mxu0 %vm238_vm1, %v15035_v61  ;;  %13906 = vmatmul.mubr.msk.f32.vlgmr.msra.gmra.mrb[12].mxu1 %vm238_vm1, %v15065_v1 }
  0x8e   : > { %13909 = vmatpush3.msk.msra.mxu0 %vm245_vm0, %v15281_v34  ;;  %13914 = vmatpush3.msk.msra.mxu1 %vm245_vm0, %v15281_v34  ;;  %v16305_v34 = vld [vmem:[#allocation26_spill] sm:$0xff] }
  0x8f   : > { %13910 = vmatprep.mubr.msk.f32.mxu0 %vm238_vm1, %v15049_v63  ;;  %13915 = vmatprep.mubr.msk.f32.mxu1 %vm238_vm1, %v15414_v35 }
  0x90   : > { %13918 = vmatprep.subr.msk.mxu0 %vm245_vm0, %v15423_v37  ;;  %13923 = vmatprep.subr.msk.mxu1 %vm245_vm0, %v15423_v37 }
  0x91   : > { %13911 = vmatmul.mubr.msk.f32.vlgmr.msra.gmra.mrb[14].mxu0 %vm238_vm1, %v15068_v3  ;;  %13916 = vmatmul.mubr.msk.f32.vlgmr.msra.gmra.mrb[14].mxu1 %vm238_vm1, %v15430_v0 }
  0x92   : > { %13919 = vmatpush3.msk.msra.mxu0 %vm245_vm0, %v15423_v37  ;;  %13924 = vmatpush3.msk.msra.mxu1 %vm245_vm0, %v15423_v37 }
  0x93   : > { %13920 = vmatprep.mubr.msk.f32.mxu0 %vm238_vm1, %v14646_v2  ;;  %13925 = vmatprep.mubr.msk.f32.mxu1 %vm238_vm1, %v14656_v5  ;;  %v15553_v2 = vld [vmem:[%s14642_s19 + $0x181] sm:$0xff]  ;;  %v16283_v5 = vld [vmem:[#allocation4_spill] sm:$0xff] }
  0x94   : > { %13928 = vmatprep.subr.msk.mxu0 %vm245_vm0, %v15423_v37  ;;  %13933 = vmatprep.subr.msk.mxu1 %vm245_vm0, %v15423_v37 }
  0x95   : > { %13921 = vmatmul.mubr.msk.f32.vlgmr.msra.gmra.mrb[0].mxu0 %vm238_vm1, %v14653_v4  ;;  %13926 = vmatmul.mubr.msk.f32.vlgmr.msra.gmra.mrb[0].mxu1 %vm238_vm1, %v14669_v7  ;;  %v16282_v4 = vld [vmem:[#allocation2_spill] sm:$0xff]  ;;  %v15569_v7 = vld [vmem:[%s14642_s19 + $0x189] sm:$0xff] }
  0x96   : > { %13929 = vmatpush3.msk.msra.mxu0 %vm245_vm0, %v15423_v37  ;;  %13934 = vmatpush3.msk.msra.mxu1 %vm245_vm0, %v15423_v37 }
  0x97   : > { %13930 = vmatprep.mubr.msk.f32.mxu0 %vm238_vm1, %v14659_v6  ;;  %13935 = vmatprep.mubr.msk.f32.mxu1 %vm238_vm1, %v14683_v9  ;;  %v15562_v6 = vld [vmem:[%s16223_s1 + $0x14] sm:$0xf]  ;;  %v16285_v9 = vld [vmem:[#allocation5_spill] sm:$0xff] }
  0x98   : > { %13938 = vmatprep.subr.msk.mxu0 %vm245_vm0, %v15423_v37  ;;  %13943 = vmatprep.subr.msk.mxu1 %vm245_vm0, %v15423_v37 }
  0x99   : > { %13931 = vmatmul.mubr.msk.f32.vlgmr.msra.gmra.mrb[2].mxu0 %vm238_vm1, %v14672_v8  ;;  %13936 = vmatmul.mubr.msk.f32.vlgmr.msra.gmra.mrb[2].mxu1 %vm238_vm1, %v14697_v11  ;;  %v16284_v8 = vld [vmem:[#allocation3_spill] sm:$0xff]  ;;  %v16287_v11 = vld [vmem:[#allocation8_spill] sm:$0xff] }
  0x9a   : > { %13939 = vmatpush3.msk.msra.mxu0 %vm245_vm0, %v15423_v37  ;;  %13944 = vmatpush3.msk.msra.mxu1 %vm245_vm0, %v15423_v37 }
  0x9b   : > { %13940 = vmatprep.mubr.msk.f32.mxu0 %vm238_vm1, %v14686_v10  ;;  %13945 = vmatprep.mubr.msk.f32.mxu1 %vm238_vm1, %v14711_v13  ;;  %v16286_v10 = vld [vmem:[#allocation6_spill] sm:$0xff] }
  0x9c   : > { %13948 = vmatprep.subr.msk.mxu0 %vm245_vm0, %v15423_v37  ;;  %13953 = vmatprep.subr.msk.mxu1 %vm245_vm0, %v15423_v37  ;;  %v16289_v13 = vld [vmem:[#allocation10_spill] sm:$0xff] }
  0x9d   : > { %13941 = vmatmul.mubr.msk.f32.vlgmr.msra.gmra.mrb[4].mxu0 %vm238_vm1, %v14700_v12  ;;  %13946 = vmatmul.mubr.msk.f32.vlgmr.msra.gmra.mrb[4].mxu1 %vm238_vm1, %v14725_v15  ;;  %v16288_v12 = vld [vmem:[#allocation7_spill] sm:$0xff]  ;;  %v16291_v15 = vld [vmem:[#allocation12_spill] sm:$0xff] }
  0x9e   : > { %13949 = vmatpush3.msk.msra.mxu0 %vm245_vm0, %v15423_v37  ;;  %13954 = vmatpush3.msk.msra.mxu1 %vm245_vm0, %v15423_v37 }
  0x9f   : > { %13950 = vmatprep.mubr.msk.f32.mxu0 %vm238_vm1, %v14714_v14  ;;  %13955 = vmatprep.mubr.msk.f32.mxu1 %vm238_vm1, %v14739_v17  ;;  %v16290_v14 = vld [vmem:[#allocation9_spill] sm:$0xff]  ;;  %v16293_v17 = vld [vmem:[#allocation14_spill] sm:$0xff] }
  0xa0   : > { %13958 = vmatprep.subr.msk.mxu0 %vm245_vm0, %v15423_v37  ;;  %13963 = vmatprep.subr.msk.mxu1 %vm245_vm0, %v15423_v37 }
  0xa1   : > { %13951 = vmatmul.mubr.msk.f32.vlgmr.msra.gmra.mrb[6].mxu0 %vm238_vm1, %v14728_v16  ;;  %13956 = vmatmul.mubr.msk.f32.vlgmr.msra.gmra.mrb[6].mxu1 %vm238_vm1, %v14753_v19  ;;  %v16292_v16 = vld [vmem:[#allocation11_spill] sm:$0xff]  ;;  %v16295_v19 = vld [vmem:[#allocation16_spill] sm:$0xff] }
  0xa2   : > { %13959 = vmatpush3.msk.msra.mxu0 %vm245_vm0, %v15423_v37  ;;  %13964 = vmatpush3.msk.msra.mxu1 %vm245_vm0, %v15423_v37 }
  0xa3   : > { %13960 = vmatprep.mubr.msk.f32.mxu0 %vm238_vm1, %v14742_v18  ;;  %13965 = vmatprep.mubr.msk.f32.mxu1 %vm238_vm1, %v14767_v21  ;;  %v16294_v18 = vld [vmem:[#allocation13_spill] sm:$0xff]  ;;  %v16297_v21 = vld [vmem:[#allocation18_spill] sm:$0xff] }
  0xa4   : > { %13968 = vmatprep.subr.msk.mxu0 %vm245_vm0, %v15423_v37  ;;  %13973 = vmatprep.subr.msk.mxu1 %vm245_vm0, %v15423_v37 }
  0xa5   : > { %13961 = vmatmul.mubr.msk.f32.vlgmr.msra.gmra.mrb[8].mxu0 %vm238_vm1, %v14756_v20  ;;  %13966 = vmatmul.mubr.msk.f32.vlgmr.msra.gmra.mrb[8].mxu1 %vm238_vm1, %v14781_v23  ;;  %v16296_v20 = vld [vmem:[#allocation15_spill] sm:$0xff]  ;;  %v16299_v23 = vld [vmem:[#allocation20_spill] sm:$0xff] }
  0xa6   : > { %13969 = vmatpush3.msk.msra.mxu0 %vm245_vm0, %v15423_v37  ;;  %13974 = vmatpush3.msk.msra.mxu1 %vm245_vm0, %v15423_v37 }
  0xa7   : > { %13970 = vmatprep.mubr.msk.f32.mxu0 %vm238_vm1, %v14770_v22  ;;  %13975 = vmatprep.mubr.msk.f32.mxu1 %vm238_vm1, %v14795_v25  ;;  %v16298_v22 = vld [vmem:[#allocation17_spill] sm:$0xff]  ;;  %v16301_v25 = vld [vmem:[#allocation22_spill] sm:$0xff] }
  0xa8   : > { %13978 = vmatprep.subr.msk.mxu0 %vm245_vm0, %v15423_v37  ;;  %13983 = vmatprep.subr.msk.mxu1 %vm245_vm0, %v15423_v37 }
  0xa9   : > { %13971 = vmatmul.mubr.msk.f32.vlgmr.msra.gmra.mrb[10].mxu0 %vm238_vm1, %v14784_v24  ;;  %13976 = vmatmul.mubr.msk.f32.vlgmr.msra.gmra.mrb[10].mxu1 %vm238_vm1, %v14809_v27  ;;  %v16300_v24 = vld [vmem:[#allocation19_spill] sm:$0xff]  ;;  %v16303_v27 = vld [vmem:[#allocation24_spill] sm:$0xff] }
  0xaa   : > { %13979 = vmatpush3.msk.msra.mxu0 %vm245_vm0, %v15423_v37  ;;  %13984 = vmatpush3.msk.msra.mxu1 %vm245_vm0, %v15423_v37 }
  0xab   : > { %13980 = vmatprep.mubr.msk.f32.mxu0 %vm238_vm1, %v14798_v26  ;;  %13985 = vmatprep.mubr.msk.f32.mxu1 %vm238_vm1, %v14823_v29  ;;  %v16302_v26 = vld [vmem:[#allocation21_spill] sm:$0xff]  ;;  %v16304_v29 = vld [vmem:[#allocation23_spill] sm:$0xff] }
  0xac   : > { %13988 = vmatprep.subr.msk.mxu0 %vm245_vm0, %v15423_v37  ;;  %13993 = vmatprep.subr.msk.mxu1 %vm245_vm0, %v15423_v37 }
  0xad   : > { %13981 = vmatmul.mubr.msk.f32.vlgmr.msra.gmra.mrb[12].mxu0 %vm238_vm1, %v16282_v4  ;;  %13986 = vmatmul.mubr.msk.f32.vlgmr.msra.gmra.mrb[12].mxu1 %vm238_vm1, %v16283_v5  ;;  %v16307_v4 = vld [vmem:[#allocation28_spill] sm:$0xff]  ;;  %v16308_v5 = vld [vmem:[#allocation27_spill] sm:$0xff] }
  0xae   : > { %13989 = vmatpush3.msk.msra.mxu0 %vm245_vm0, %v15423_v37  ;;  %13994 = vmatpush3.msk.msra.mxu1 %vm245_vm0, %v15423_v37  ;;  %v16306_v37 = vld [vmem:[#allocation25_spill] sm:$0xff] }
  0xaf   : > { %13990 = vmatprep.mubr.msk.f32.mxu0 %vm238_vm1, %v16284_v8  ;;  %13995 = vmatprep.mubr.msk.f32.mxu1 %vm238_vm1, %v15553_v2  ;;  %v16309_v8 = vld [vmem:[#allocation29_spill] sm:$0xff] }
  0xb0   : > { %13998 = vmatprep.subr.msk.mxu0 %vm245_vm0, %v15562_v6  ;;  %14003 = vmatprep.subr.msk.mxu1 %vm245_vm0, %v15562_v6 }
  0xb1   : > { %13991 = vmatmul.mubr.msk.f32.vlgmr.msra.gmra.mrb[14].mxu0 %vm238_vm1, %v16285_v9  ;;  %13996 = vmatmul.mubr.msk.f32.vlgmr.msra.gmra.mrb[14].mxu1 %vm238_vm1, %v15569_v7  ;;  %v15692_v9 = vld [vmem:[%s14642_s19 + $0x182] sm:$0xff] }
  0xb2   : > { %13999 = vmatpush3.msk.msra.mxu0 %vm245_vm0, %v15562_v6  ;;  %14004 = vmatpush3.msk.msra.mxu1 %vm245_vm0, %v15562_v6 }
  0xb3   : > { %14000 = vmatprep.mubr.msk.f32.mxu0 %vm238_vm1, %v16286_v10  ;;  %14005 = vmatprep.mubr.msk.f32.mxu1 %vm238_vm1, %v16287_v11  ;;  %v13083_v10 = vld [vmem:[%s14642_s19 + $0x4a] sm:$0xff]  ;;  %v13084_v11 = vld [vmem:[%s14642_s19 + $0x52] sm:$0xff] }
  0xb4   : > { %14008 = vmatprep.subr.msk.mxu0 %vm245_vm0, %v15562_v6  ;;  %14013 = vmatprep.subr.msk.mxu1 %vm245_vm0, %v15562_v6 }
  0xb5   : > { %14001 = vmatmul.mubr.msk.f32.vlgmr.msra.gmra.mrb[0].mxu0 %vm238_vm1, %v16288_v12  ;;  %14006 = vmatmul.mubr.msk.f32.vlgmr.msra.gmra.mrb[0].mxu1 %vm238_vm1, %v16289_v13  ;;  %v13087_v12 = vld [vmem:[%s14642_s19 + $0x7a] sm:$0xff]  ;;  %v13086_v13 = vld [vmem:[%s14642_s19 + $0x6a] sm:$0xff] }
  0xb6   : > { %14009 = vmatpush3.msk.msra.mxu0 %vm245_vm0, %v15562_v6  ;;  %14014 = vmatpush3.msk.msra.mxu1 %vm245_vm0, %v15562_v6 }
  0xb7   : > { %14010 = vmatprep.mubr.msk.f32.mxu0 %vm238_vm1, %v16290_v14  ;;  %14015 = vmatprep.mubr.msk.f32.mxu1 %vm238_vm1, %v16291_v15  ;;  %v13088_v14 = vld [vmem:[%s14642_s19 + $0x82] sm:$0xff]  ;;  %v13089_v15 = vld [vmem:[%s14642_s19 + $0x92] sm:$0xff] }
  0xb8   : > { %14018 = vmatprep.subr.msk.mxu0 %vm245_vm0, %v15562_v6  ;;  %14023 = vmatprep.subr.msk.mxu1 %vm245_vm0, %v15562_v6 }
  0xb9   : > { %14011 = vmatmul.mubr.msk.f32.vlgmr.msra.gmra.mrb[2].mxu0 %vm238_vm1, %v16292_v16  ;;  %14016 = vmatmul.mubr.msk.f32.vlgmr.msra.gmra.mrb[2].mxu1 %vm238_vm1, %v16293_v17  ;;  %v13091_v16 = vld [vmem:[%s14642_s19 + $0xaa] sm:$0xff]  ;;  %v13090_v17 = vld [vmem:[%s14642_s19 + $0x9a] sm:$0xff] }
  0xba   : > { %14019 = vmatpush3.msk.msra.mxu0 %vm245_vm0, %v15562_v6  ;;  %14024 = vmatpush3.msk.msra.mxu1 %vm245_vm0, %v15562_v6 }
  0xbb   : > { %14020 = vmatprep.mubr.msk.f32.mxu0 %vm238_vm1, %v16294_v18  ;;  %14025 = vmatprep.mubr.msk.f32.mxu1 %vm238_vm1, %v16295_v19  ;;  %v13092_v18 = vld [vmem:[%s14642_s19 + $0xb2] sm:$0xff]  ;;  %v13093_v19 = vld [vmem:[%s14642_s19 + $0xc2] sm:$0xff] }
  0xbc   : > { %14028 = vmatprep.subr.msk.mxu0 %vm245_vm0, %v15562_v6  ;;  %14033 = vmatprep.subr.msk.mxu1 %vm245_vm0, %v15562_v6 }
  0xbd   : > { %14021 = vmatmul.mubr.msk.f32.vlgmr.msra.gmra.mrb[4].mxu0 %vm238_vm1, %v16296_v20  ;;  %14026 = vmatmul.mubr.msk.f32.vlgmr.msra.gmra.mrb[4].mxu1 %vm238_vm1, %v16297_v21  ;;  %v13095_v20 = vld [vmem:[%s14642_s19 + $0xda] sm:$0xff]  ;;  %v13094_v21 = vld [vmem:[%s14642_s19 + $0xca] sm:$0xff] }
  0xbe   : > { %14029 = vmatpush3.msk.msra.mxu0 %vm245_vm0, %v15562_v6  ;;  %14034 = vmatpush3.msk.msra.mxu1 %vm245_vm0, %v15562_v6 }
  0xbf   : > { %14030 = vmatprep.mubr.msk.f32.mxu0 %vm238_vm1, %v16298_v22  ;;  %14035 = vmatprep.mubr.msk.f32.mxu1 %vm238_vm1, %v16299_v23  ;;  %v13096_v22 = vld [vmem:[%s14642_s19 + $0xe2] sm:$0xff]  ;;  %v13097_v23 = vld [vmem:[%s14642_s19 + $0xf2] sm:$0xff] }
  0xc0   : > { %14038 = vmatprep.subr.msk.mxu0 %vm245_vm0, %v15562_v6  ;;  %14043 = vmatprep.subr.msk.mxu1 %vm245_vm0, %v15562_v6 }
  0xc1   : > { %14031 = vmatmul.mubr.msk.f32.vlgmr.msra.gmra.mrb[6].mxu0 %vm238_vm1, %v16300_v24  ;;  %14036 = vmatmul.mubr.msk.f32.vlgmr.msra.gmra.mrb[6].mxu1 %vm238_vm1, %v16301_v25  ;;  %v13099_v24 = vld [vmem:[%s14642_s19 + $0x10a] sm:$0xff]  ;;  %v13098_v25 = vld [vmem:[%s14642_s19 + $0xfa] sm:$0xff] }
  0xc2   : > { %14039 = vmatpush3.msk.msra.mxu0 %vm245_vm0, %v15562_v6  ;;  %14044 = vmatpush3.msk.msra.mxu1 %vm245_vm0, %v15562_v6 }
  0xc3   : > { %14040 = vmatprep.mubr.msk.f32.mxu0 %vm238_vm1, %v16302_v26  ;;  %14045 = vmatprep.mubr.msk.f32.mxu1 %vm238_vm1, %v16303_v27  ;;  %v13100_v26 = vld [vmem:[%s14642_s19 + $0x112] sm:$0xff]  ;;  %v13101_v27 = vld [vmem:[%s14642_s19 + $0x122] sm:$0xff] }
  0xc4   : > { %14048 = vmatprep.subr.msk.mxu0 %vm245_vm0, %v15562_v6  ;;  %14053 = vmatprep.subr.msk.mxu1 %vm245_vm0, %v15562_v6 }
  0xc5   : > { %14041 = vmatmul.mubr.msk.f32.vlgmr.msra.gmra.mrb[8].mxu0 %vm238_vm1, %v16304_v29  ;;  %14046 = vmatmul.mubr.msk.f32.vlgmr.msra.gmra.mrb[8].mxu1 %vm238_vm1, %v16305_v34  ;;  %v13103_v29 = vld [vmem:[%s14642_s19 + $0x13a] sm:$0xff]  ;;  %v13102_v34 = vld [vmem:[%s14642_s19 + $0x12a] sm:$0xff] }
  0xc6   : > { %14049 = vmatpush3.msk.msra.mxu0 %vm245_vm0, %v15562_v6  ;;  %14054 = vmatpush3.msk.msra.mxu1 %vm245_vm0, %v15562_v6 }
  0xc7   : > { %14050 = vmatprep.mubr.msk.f32.mxu0 %vm238_vm1, %v16306_v37  ;;  %14055 = vmatprep.mubr.msk.f32.mxu1 %vm238_vm1, %v16307_v4  ;;  %v13104_v37 = vld [vmem:[%s14642_s19 + $0x142] sm:$0xff]  ;;  %v13105_v4 = vld [vmem:[%s14642_s19 + $0x152] sm:$0xff] }
  0xc8   : > { %14058 = vmatprep.subr.msk.mxu0 %vm245_vm0, %v15562_v6  ;;  %14063 = vmatprep.subr.msk.mxu1 %vm245_vm0, %v15562_v6 }
  0xc9   : > { %14051 = vmatmul.mubr.msk.f32.vlgmr.msra.gmra.mrb[10].mxu0 %vm238_vm1, %v16308_v5  ;;  %14056 = vmatmul.mubr.msk.f32.vlgmr.msra.gmra.mrb[10].mxu1 %vm238_vm1, %v15255_v33  ;;  %v15701_v33 = vld [vmem:[%s16223_s1 + $0x18] sm:$0xf]  ;;  %v13107_v5 = vld [vmem:[%s14642_s19 + $0x16a] sm:$0xff] }
  0xca   : > { %14059 = vmatpush3.msk.msra.mxu0 %vm245_vm0, %v15562_v6  ;;  %14064 = vmatpush3.msk.msra.mxu1 %vm245_vm0, %v15562_v6 }
  0xcb   : > { %14060 = vmatprep.mubr.msk.f32.mxu0 %vm238_vm1, %v16309_v8  ;;  %14065 = vmatprep.mubr.msk.f32.mxu1 %vm238_vm1, %v15269_v30  ;;  %v15708_v30 = vld [vmem:[%s14642_s19 + $0x18a] sm:$0xff]  ;;  %v13106_v8 = vld [vmem:[%s14642_s19 + $0x15a] sm:$0xff] }
  0xcc   : > { %14068 = vmatprep.subr.msk.mxu0 %vm245_vm0, %v15562_v6  ;;  %14073 = vmatprep.subr.msk.mxu1 %vm245_vm0, %v15562_v6 }
  0xcd   : > { %14061 = vmatmul.mubr.msk.f32.vlgmr.msra.gmra.mrb[12].mxu0 %vm238_vm1, %v15258_v36  ;;  %14066 = vmatmul.mubr.msk.f32.vlgmr.msra.gmra.mrb[12].mxu1 %vm238_vm1, %v15288_v31  ;;  %v13027_v31 = vld [vmem:[%s14642_s19 + $0x171] sm:$0xff]  ;;  %v13030_v36 = vld [vmem:[%s14642_s19 + $0x199] sm:$0xff] }
  0xce   : > { %14069 = vmatpush3.msk.msra.mxu0 %vm245_vm0, %v15562_v6  ;;  %14074 = vmatpush3.msk.msra.mxu1 %vm245_vm0, %v15562_v6  ;;  %v13081_v6 = vld [vmem:[%s14642_s19 + $0x32] sm:$0xff] }
  0xcf   : > { %14070 = vmatprep.mubr.msk.f32.mxu0 %vm238_vm1, %v15272_v32  ;;  %14075 = vmatprep.mubr.msk.f32.mxu1 %vm238_vm1, %v15692_v9  ;;  %v15838_v32 = vld [vmem:[%s16223_s1 + $0x1c] sm:$0xf] }
  0xd0   : > { %14078 = vmatprep.subr.msk.mxu0 %vm245_vm0, %v15701_v33  ;;  %14083 = vmatprep.subr.msk.mxu1 %vm245_vm0, %v15701_v33 }
  0xd1   : > { %14071 = vmatmul.mubr.msk.f32.vlgmr.msra.gmra.mrb[14].mxu0 %vm238_vm1, %v15291_v28  ;;  %14076 = vmatmul.mubr.msk.f32.vlgmr.msra.gmra.mrb[14].mxu1 %vm238_vm1, %v15708_v30  ;;  %v12949_v28 = vld [vmem:[%s14642_s19 + $0x198] sm:$0xff] }
  0xd2   : > { %14079 = vmatpush3.msk.msra.mxu0 %vm245_vm0, %v15701_v33  ;;  %14084 = vmatpush3.msk.msra.mxu1 %vm245_vm0, %v15701_v33 }
  0xd3   : > { %14080 = vmatprep.mubr.msk.f32.mxu0 %vm238_vm1, %v14879_v38  ;;  %14085 = vmatprep.mubr.msk.f32.mxu1 %vm238_vm1, %v14882_v39  ;;  %v12950_v38 = vld [vmem:[%s14642_s19 + $0x1a0] sm:$0xff]  ;;  %v13000_v39 = vld [vmem:[%s14642_s19 + $0x31] sm:$0xff] }
  0xd4   : > { %14088 = vmatprep.subr.msk.mxu0 %vm245_vm0, %v15701_v33  ;;  %14093 = vmatprep.subr.msk.mxu1 %vm245_vm0, %v15701_v33 }
  0xd5   : > { %14081 = vmatmul.mubr.msk.f32.vlgmr.msra.gmra.mrb[0].mxu0 %vm238_vm1, %v14892_v40  ;;  %14086 = vmatmul.mubr.msk.f32.vlgmr.msra.gmra.mrb[0].mxu1 %vm238_vm1, %v14895_v41  ;;  %v13002_v40 = vld [vmem:[%s14642_s19 + $0x49] sm:$0xff]  ;;  %v13001_v41 = vld [vmem:[%s14642_s19 + $0x39] sm:$0xff] }
  0xd6   : > { %14089 = vmatpush3.msk.msra.mxu0 %vm245_vm0, %v15701_v33  ;;  %14094 = vmatpush3.msk.msra.mxu1 %vm245_vm0, %v15701_v33 }
  0xd7   : > { %14090 = vmatprep.mubr.msk.f32.mxu0 %vm238_vm1, %v14906_v42  ;;  %14095 = vmatprep.mubr.msk.f32.mxu1 %vm238_vm1, %v14909_v43  ;;  %v13003_v42 = vld [vmem:[%s14642_s19 + $0x51] sm:$0xff]  ;;  %v13004_v43 = vld [vmem:[%s14642_s19 + $0x61] sm:$0xff] }
  0xd8   : > { %14098 = vmatprep.subr.msk.mxu0 %vm245_vm0, %v15701_v33  ;;  %14103 = vmatprep.subr.msk.mxu1 %vm245_vm0, %v15701_v33 }
  0xd9   : > { %14091 = vmatmul.mubr.msk.f32.vlgmr.msra.gmra.mrb[2].mxu0 %vm238_vm1, %v14920_v44  ;;  %14096 = vmatmul.mubr.msk.f32.vlgmr.msra.gmra.mrb[2].mxu1 %vm238_vm1, %v14923_v45  ;;  %v13006_v44 = vld [vmem:[%s14642_s19 + $0x79] sm:$0xff]  ;;  %v13005_v45 = vld [vmem:[%s14642_s19 + $0x69] sm:$0xff] }
  0xda   : > { %14099 = vmatpush3.msk.msra.mxu0 %vm245_vm0, %v15701_v33  ;;  %14104 = vmatpush3.msk.msra.mxu1 %vm245_vm0, %v15701_v33 }
  0xdb   : > { %14100 = vmatprep.mubr.msk.f32.mxu0 %vm238_vm1, %v14934_v46  ;;  %14105 = vmatprep.mubr.msk.f32.mxu1 %vm238_vm1, %v14937_v47  ;;  %v13007_v46 = vld [vmem:[%s14642_s19 + $0x81] sm:$0xff]  ;;  %v13008_v47 = vld [vmem:[%s14642_s19 + $0x91] sm:$0xff] }
  0xdc   : > { %14108 = vmatprep.subr.msk.mxu0 %vm245_vm0, %v15701_v33  ;;  %14113 = vmatprep.subr.msk.mxu1 %vm245_vm0, %v15701_v33 }
  0xdd   : > { %14101 = vmatmul.mubr.msk.f32.vlgmr.msra.gmra.mrb[4].mxu0 %vm238_vm1, %v14948_v48  ;;  %14106 = vmatmul.mubr.msk.f32.vlgmr.msra.gmra.mrb[4].mxu1 %vm238_vm1, %v14951_v49  ;;  %v13010_v48 = vld [vmem:[%s14642_s19 + $0xa9] sm:$0xff]  ;;  %v13009_v49 = vld [vmem:[%s14642_s19 + $0x99] sm:$0xff] }
  0xde   : > { %14109 = vmatpush3.msk.msra.mxu0 %vm245_vm0, %v15701_v33  ;;  %14114 = vmatpush3.msk.msra.mxu1 %vm245_vm0, %v15701_v33 }
  0xdf   : > { %14110 = vmatprep.mubr.msk.f32.mxu0 %vm238_vm1, %v14962_v50  ;;  %14115 = vmatprep.mubr.msk.f32.mxu1 %vm238_vm1, %v14965_v51  ;;  %v13011_v50 = vld [vmem:[%s14642_s19 + $0xb1] sm:$0xff]  ;;  %v13012_v51 = vld [vmem:[%s14642_s19 + $0xc1] sm:$0xff] }
  0xe0   : > { %14118 = vmatprep.subr.msk.mxu0 %vm245_vm0, %v15701_v33  ;;  %14123 = vmatprep.subr.msk.mxu1 %vm245_vm0, %v15701_v33 }
  0xe1   : > { %14111 = vmatmul.mubr.msk.f32.vlgmr.msra.gmra.mrb[6].mxu0 %vm238_vm1, %v14976_v52  ;;  %14116 = vmatmul.mubr.msk.f32.vlgmr.msra.gmra.mrb[6].mxu1 %vm238_vm1, %v14979_v53  ;;  %v13014_v52 = vld [vmem:[%s14642_s19 + $0xd9] sm:$0xff]  ;;  %v13013_v53 = vld [vmem:[%s14642_s19 + $0xc9] sm:$0xff] }
  0xe2   : > { %14119 = vmatpush3.msk.msra.mxu0 %vm245_vm0, %v15701_v33  ;;  %14124 = vmatpush3.msk.msra.mxu1 %vm245_vm0, %v15701_v33 }
  0xe3   : > { %14120 = vmatprep.mubr.msk.f32.mxu0 %vm238_vm1, %v14990_v54  ;;  %14125 = vmatprep.mubr.msk.f32.mxu1 %vm238_vm1, %v14993_v55  ;;  %v13015_v54 = vld [vmem:[%s14642_s19 + $0xe1] sm:$0xff]  ;;  %v13016_v55 = vld [vmem:[%s14642_s19 + $0xf1] sm:$0xff] }
  0xe4   : > { %14128 = vmatprep.subr.msk.mxu0 %vm245_vm0, %v15701_v33  ;;  %14133 = vmatprep.subr.msk.mxu1 %vm245_vm0, %v15701_v33 }
  0xe5   : > { %14121 = vmatmul.mubr.msk.f32.vlgmr.msra.gmra.mrb[8].mxu0 %vm238_vm1, %v15004_v56  ;;  %14126 = vmatmul.mubr.msk.f32.vlgmr.msra.gmra.mrb[8].mxu1 %vm238_vm1, %v15007_v57  ;;  %v13018_v56 = vld [vmem:[%s14642_s19 + $0x109] sm:$0xff]  ;;  %v13017_v57 = vld [vmem:[%s14642_s19 + $0xf9] sm:$0xff] }
  0xe6   : > { %14129 = vmatpush3.msk.msra.mxu0 %vm245_vm0, %v15701_v33  ;;  %14134 = vmatpush3.msk.msra.mxu1 %vm245_vm0, %v15701_v33 }
  0xe7   : > { %14130 = vmatprep.mubr.msk.f32.mxu0 %vm238_vm1, %v15018_v58  ;;  %14135 = vmatprep.mubr.msk.f32.mxu1 %vm238_vm1, %v15021_v59  ;;  %v13019_v58 = vld [vmem:[%s14642_s19 + $0x111] sm:$0xff]  ;;  %v13020_v59 = vld [vmem:[%s14642_s19 + $0x121] sm:$0xff] }
  0xe8   : > { %14138 = vmatprep.subr.msk.mxu0 %vm245_vm0, %v15701_v33  ;;  %14143 = vmatprep.subr.msk.mxu1 %vm245_vm0, %v15701_v33 }
  0xe9   : > { %14131 = vmatmul.mubr.msk.f32.vlgmr.msra.gmra.mrb[10].mxu0 %vm238_vm1, %v15032_v60  ;;  %14136 = vmatmul.mubr.msk.f32.vlgmr.msra.gmra.mrb[10].mxu1 %vm238_vm1, %v15035_v61  ;;  %v13022_v60 = vld [vmem:[%s14642_s19 + $0x139] sm:$0xff]  ;;  %v13021_v61 = vld [vmem:[%s14642_s19 + $0x129] sm:$0xff] }
  0xea   : > { %14139 = vmatpush3.msk.msra.mxu0 %vm245_vm0, %v15701_v33  ;;  %14144 = vmatpush3.msk.msra.mxu1 %vm245_vm0, %v15701_v33 }
  0xeb   : > { %14140 = vmatprep.mubr.msk.f32.mxu0 %vm238_vm1, %v15046_v62  ;;  %14145 = vmatprep.mubr.msk.f32.mxu1 %vm238_vm1, %v15049_v63  ;;  %v13023_v62 = vld [vmem:[%s14642_s19 + $0x141] sm:$0xff]  ;;  %v13024_v63 = vld [vmem:[%s14642_s19 + $0x151] sm:$0xff] }
  0xec   : > { %14148 = vmatprep.subr.msk.mxu0 %vm245_vm0, %v15701_v33  ;;  %14153 = vmatprep.subr.msk.mxu1 %vm245_vm0, %v15701_v33 }
  0xed   : > { %14141 = vmatmul.mubr.msk.f32.vlgmr.msra.gmra.mrb[12].mxu0 %vm238_vm1, %v15065_v1  ;;  %14146 = vmatmul.mubr.msk.f32.vlgmr.msra.gmra.mrb[12].mxu1 %vm238_vm1, %v15068_v3  ;;  %v13026_v1 = vld [vmem:[%s14642_s19 + $0x169] sm:$0xff]  ;;  %v13025_v3 = vld [vmem:[%s14642_s19 + $0x159] sm:$0xff] }
  0xee   : > { %14149 = vmatpush3.msk.msra.mxu0 %vm245_vm0, %v15701_v33  ;;  %14154 = vmatpush3.msk.msra.mxu1 %vm245_vm0, %v15701_v33  ;;  %v13108_v33 = vld [vmem:[%s14642_s19 + $0x172] sm:$0xff] }
  0xef   : > { %14150 = vmatprep.mubr.msk.f32.mxu0 %vm238_vm1, %v15414_v35  ;;  %14155 = vmatprep.mubr.msk.f32.mxu1 %vm238_vm1, %v12949_v28  ;;  %v15971_v35 = vld [vmem:[%s16223_s1 + $0x20] sm:$0xf] }
  0xf0   : > { %14158 = vmatprep.subr.msk.mxu0 %vm245_vm0, %v15838_v32  ;;  %14163 = vmatprep.subr.msk.mxu1 %vm245_vm0, %v15838_v32  ;;  %v13111_v28 = vld [vmem:[%s14642_s19 + $0x19a] sm:$0xff] }
  0xf1   : > { %14151 = vmatmul.mubr.msk.f32.vlgmr.msra.gmra.mrb[14].mxu0 %vm238_vm1, %v15430_v0  ;;  %14156 = vmatmul.mubr.msk.f32.vlgmr.msra.gmra.mrb[14].mxu1 %vm238_vm1, %v12950_v38  ;;  %v13031_v0 = vld [vmem:[%s14642_s19 + $0x1a1] sm:$0xff]  ;;  %v16116_v38 = vld [vmem:[%s16224_s2] ss:$0 sm:$0xff] }
  0xf2   : > { %14159 = vmatpush3.msk.msra.mxu0 %vm245_vm0, %v15838_v32  ;;  %14164 = vmatpush3.msk.msra.mxu1 %vm245_vm0, %v15838_v32 }
  0xf3   : > { %14160 = vmatprep.mubr.msk.f32.mxu0 %vm238_vm1, %v13000_v39  ;;  %14165 = vmatprep.mubr.msk.f32.mxu1 %vm238_vm1, %v13002_v40 }
  0xf4   : > { %14168 = vmatprep.subr.msk.mxu0 %vm245_vm0, %v15838_v32  ;;  %14173 = vmatprep.subr.msk.mxu1 %vm245_vm0, %v15838_v32 }
  0xf5   : > { %14161 = vmatmul.mubr.msk.f32.vlgmr.msra.gmra.mrb[0].mxu0 %vm238_vm1, %v13001_v41  ;;  %14166 = vmatmul.mubr.msk.f32.vlgmr.msra.gmra.mrb[0].mxu1 %vm238_vm1, %v13003_v42 }
  0xf6   : > { %14169 = vmatpush3.msk.msra.mxu0 %vm245_vm0, %v15838_v32  ;;  %14174 = vmatpush3.msk.msra.mxu1 %vm245_vm0, %v15838_v32 }
  0xf7   : > { %14170 = vmatprep.mubr.msk.f32.mxu0 %vm238_vm1, %v13004_v43  ;;  %14175 = vmatprep.mubr.msk.f32.mxu1 %vm238_vm1, %v13006_v44 }
  0xf8   : > { %14178 = vmatprep.subr.msk.mxu0 %vm245_vm0, %v15838_v32  ;;  %14183 = vmatprep.subr.msk.mxu1 %vm245_vm0, %v15838_v32 }
  0xf9   : > { %14171 = vmatmul.mubr.msk.f32.vlgmr.msra.gmra.mrb[2].mxu0 %vm238_vm1, %v13005_v45  ;;  %14176 = vmatmul.mubr.msk.f32.vlgmr.msra.gmra.mrb[2].mxu1 %vm238_vm1, %v13007_v46 }
  0xfa   : > { %14179 = vmatpush3.msk.msra.mxu0 %vm245_vm0, %v15838_v32  ;;  %14184 = vmatpush3.msk.msra.mxu1 %vm245_vm0, %v15838_v32 }
  0xfb   : > { %14180 = vmatprep.mubr.msk.f32.mxu0 %vm238_vm1, %v13008_v47  ;;  %14185 = vmatprep.mubr.msk.f32.mxu1 %vm238_vm1, %v13010_v48 }
  0xfc   : > { %14188 = vmatprep.subr.msk.mxu0 %vm245_vm0, %v15838_v32  ;;  %14193 = vmatprep.subr.msk.mxu1 %vm245_vm0, %v15838_v32 }
  0xfd   : > { %14181 = vmatmul.mubr.msk.f32.vlgmr.msra.gmra.mrb[4].mxu0 %vm238_vm1, %v13009_v49  ;;  %14186 = vmatmul.mubr.msk.f32.vlgmr.msra.gmra.mrb[4].mxu1 %vm238_vm1, %v13011_v50 }
  0xfe   : > { %14189 = vmatpush3.msk.msra.mxu0 %vm245_vm0, %v15838_v32  ;;  %14194 = vmatpush3.msk.msra.mxu1 %vm245_vm0, %v15838_v32 }
  0xff   : > { %14190 = vmatprep.mubr.msk.f32.mxu0 %vm238_vm1, %v13012_v51  ;;  %14195 = vmatprep.mubr.msk.f32.mxu1 %vm238_vm1, %v13014_v52 }
 0x100   : > { %14198 = vmatprep.subr.msk.mxu0 %vm245_vm0, %v15838_v32  ;;  %14203 = vmatprep.subr.msk.mxu1 %vm245_vm0, %v15838_v32 }
 0x101   : > { %14191 = vmatmul.mubr.msk.f32.vlgmr.msra.gmra.mrb[6].mxu0 %vm238_vm1, %v13013_v53  ;;  %14196 = vmatmul.mubr.msk.f32.vlgmr.msra.gmra.mrb[6].mxu1 %vm238_vm1, %v13015_v54 }
 0x102   : > { %14199 = vmatpush3.msk.msra.mxu0 %vm245_vm0, %v15838_v32  ;;  %14204 = vmatpush3.msk.msra.mxu1 %vm245_vm0, %v15838_v32 }
 0x103   : > { %14200 = vmatprep.mubr.msk.f32.mxu0 %vm238_vm1, %v13016_v55  ;;  %14205 = vmatprep.mubr.msk.f32.mxu1 %vm238_vm1, %v13018_v56 }
 0x104   : > { %14208 = vmatprep.subr.msk.mxu0 %vm245_vm0, %v15838_v32  ;;  %14213 = vmatprep.subr.msk.mxu1 %vm245_vm0, %v15838_v32 }
 0x105   : > { %14201 = vmatmul.mubr.msk.f32.vlgmr.msra.gmra.mrb[8].mxu0 %vm238_vm1, %v13017_v57  ;;  %14206 = vmatmul.mubr.msk.f32.vlgmr.msra.gmra.mrb[8].mxu1 %vm238_vm1, %v13019_v58 }
 0x106   : > { %14209 = vmatpush3.msk.msra.mxu0 %vm245_vm0, %v15838_v32  ;;  %14214 = vmatpush3.msk.msra.mxu1 %vm245_vm0, %v15838_v32 }
 0x107   : > { %14210 = vmatprep.mubr.msk.f32.mxu0 %vm238_vm1, %v13020_v59  ;;  %14215 = vmatprep.mubr.msk.f32.mxu1 %vm238_vm1, %v13022_v60 }
 0x108   : > { %14218 = vmatprep.subr.msk.mxu0 %vm245_vm0, %v15838_v32  ;;  %14223 = vmatprep.subr.msk.mxu1 %vm245_vm0, %v15838_v32 }
 0x109   : > { %14211 = vmatmul.mubr.msk.f32.vlgmr.msra.gmra.mrb[10].mxu0 %vm238_vm1, %v13021_v61  ;;  %14216 = vmatmul.mubr.msk.f32.vlgmr.msra.gmra.mrb[10].mxu1 %vm238_vm1, %v13023_v62 }
 0x10a   : > { %14219 = vmatpush3.msk.msra.mxu0 %vm245_vm0, %v15838_v32  ;;  %14224 = vmatpush3.msk.msra.mxu1 %vm245_vm0, %v15838_v32 }
 0x10b   : > { %14220 = vmatprep.mubr.msk.f32.mxu0 %vm238_vm1, %v13024_v63  ;;  %14225 = vmatprep.mubr.msk.f32.mxu1 %vm238_vm1, %v13026_v1 }
 0x10c   : > { %14228 = vmatprep.subr.msk.mxu0 %vm245_vm0, %v15838_v32  ;;  %14233 = vmatprep.subr.msk.mxu1 %vm245_vm0, %v15838_v32 }
 0x10d   : > { %14221 = vmatmul.mubr.msk.f32.vlgmr.msra.gmra.mrb[12].mxu0 %vm238_vm1, %v13025_v3  ;;  %14226 = vmatmul.mubr.msk.f32.vlgmr.msra.gmra.mrb[12].mxu1 %vm238_vm1, %v13027_v31 }
 0x10e   : > { %14229 = vmatpush3.msk.msra.mxu0 %vm245_vm0, %v15838_v32  ;;  %14234 = vmatpush3.msk.msra.mxu1 %vm245_vm0, %v15838_v32  ;;  %v13112_v32 = vld [vmem:[%s14642_s19 + $0x1a2] sm:$0xff] }
 0x10f   : > { %14230 = vmatprep.mubr.msk.f32.mxu0 %vm238_vm1, %v15553_v2  ;;  %14235 = vmatprep.mubr.msk.f32.mxu1 %vm238_vm1, %v13030_v36  ;;  %v13082_v2 = vld [vmem:[%s14642_s19 + $0x3a] sm:$0xff] }
 0x110   : > { %14238 = vmatprep.subr.msk.mxu0 %vm245_vm0, %v15971_v35  ;;  %14243 = vmatprep.subr.msk.mxu1 %vm245_vm0, %v15971_v35 }
 0x111   : > { %14231 = vmatmul.mubr.msk.f32.vlgmr.msra.gmra.mrb[14].mxu0 %vm238_vm1, %v15569_v7  ;;  %14236 = vmatmul.mubr.msk.f32.vlgmr.msra.gmra.mrb[14].mxu1 %vm238_vm1, %v13031_v0  ;;  %v13085_v7 = vld [vmem:[%s14642_s19 + $0x62] sm:$0xff] }
 0x112   : > { %14239 = vmatpush3.msk.msra.mxu0 %vm245_vm0, %v15971_v35  ;;  %14244 = vmatpush3.msk.msra.mxu1 %vm245_vm0, %v15971_v35 }
 0x113   : > { %14240 = vmatprep.mubr.msk.f32.mxu0 %vm238_vm1, %v13081_v6  ;;  %14245 = vmatprep.mubr.msk.f32.mxu1 %vm238_vm1, %v13083_v10 }
 0x114   : > { %14248 = vmatprep.subr.msk.mxu0 %vm245_vm0, %v15971_v35  ;;  %14253 = vmatprep.subr.msk.mxu1 %vm245_vm0, %v15971_v35 }
 0x115   : > { %14241 = vmatmul.mubr.msk.f32.vlgmr.msra.gmra.mrb[0].mxu0 %vm238_vm1, %v13082_v2  ;;  %14246 = vmatmul.mubr.msk.f32.vlgmr.msra.gmra.mrb[0].mxu1 %vm238_vm1, %v13084_v11 }
 0x116   : > { %14249 = vmatpush3.msk.msra.mxu0 %vm245_vm0, %v15971_v35  ;;  %14254 = vmatpush3.msk.msra.mxu1 %vm245_vm0, %v15971_v35 }
 0x117   : > { %14250 = vmatprep.mubr.msk.f32.mxu0 %vm238_vm1, %v13085_v7  ;;  %14255 = vmatprep.mubr.msk.f32.mxu1 %vm238_vm1, %v13087_v12 }
 0x118   : > { %14258 = vmatprep.subr.msk.mxu0 %vm245_vm0, %v15971_v35  ;;  %14263 = vmatprep.subr.msk.mxu1 %vm245_vm0, %v15971_v35 }
 0x119   : > { %14251 = vmatmul.mubr.msk.f32.vlgmr.msra.gmra.mrb[2].mxu0 %vm238_vm1, %v13086_v13  ;;  %14256 = vmatmul.mubr.msk.f32.vlgmr.msra.gmra.mrb[2].mxu1 %vm238_vm1, %v13088_v14 }
 0x11a   : > { %14259 = vmatpush3.msk.msra.mxu0 %vm245_vm0, %v15971_v35  ;;  %14264 = vmatpush3.msk.msra.mxu1 %vm245_vm0, %v15971_v35 }
 0x11b   : > { %14260 = vmatprep.mubr.msk.f32.mxu0 %vm238_vm1, %v13089_v15  ;;  %14265 = vmatprep.mubr.msk.f32.mxu1 %vm238_vm1, %v13091_v16 }
 0x11c   : > { %14268 = vmatprep.subr.msk.mxu0 %vm245_vm0, %v15971_v35  ;;  %14273 = vmatprep.subr.msk.mxu1 %vm245_vm0, %v15971_v35 }
 0x11d   : > { %14261 = vmatmul.mubr.msk.f32.vlgmr.msra.gmra.mrb[4].mxu0 %vm238_vm1, %v13090_v17  ;;  %14266 = vmatmul.mubr.msk.f32.vlgmr.msra.gmra.mrb[4].mxu1 %vm238_vm1, %v13092_v18 }
 0x11e   : > { %14269 = vmatpush3.msk.msra.mxu0 %vm245_vm0, %v15971_v35  ;;  %14274 = vmatpush3.msk.msra.mxu1 %vm245_vm0, %v15971_v35 }
 0x11f   : > { %14270 = vmatprep.mubr.msk.f32.mxu0 %vm238_vm1, %v13093_v19  ;;  %14275 = vmatprep.mubr.msk.f32.mxu1 %vm238_vm1, %v13095_v20 }
 0x120   : > { %14278 = vmatprep.subr.msk.mxu0 %vm245_vm0, %v15971_v35  ;;  %14283 = vmatprep.subr.msk.mxu1 %vm245_vm0, %v15971_v35 }
 0x121   : > { %14271 = vmatmul.mubr.msk.f32.vlgmr.msra.gmra.mrb[6].mxu0 %vm238_vm1, %v13094_v21  ;;  %14276 = vmatmul.mubr.msk.f32.vlgmr.msra.gmra.mrb[6].mxu1 %vm238_vm1, %v13096_v22 }
 0x122   : > { %14279 = vmatpush3.msk.msra.mxu0 %vm245_vm0, %v15971_v35  ;;  %14284 = vmatpush3.msk.msra.mxu1 %vm245_vm0, %v15971_v35 }
 0x123   : > { %14280 = vmatprep.mubr.msk.f32.mxu0 %vm238_vm1, %v13097_v23  ;;  %14285 = vmatprep.mubr.msk.f32.mxu1 %vm238_vm1, %v13099_v24 }
 0x124   : > { %14288 = vmatprep.subr.msk.mxu0 %vm245_vm0, %v15971_v35  ;;  %14293 = vmatprep.subr.msk.mxu1 %vm245_vm0, %v15971_v35 }
 0x125   : > { %14281 = vmatmul.mubr.msk.f32.vlgmr.msra.gmra.mrb[8].mxu0 %vm238_vm1, %v13098_v25  ;;  %14286 = vmatmul.mubr.msk.f32.vlgmr.msra.gmra.mrb[8].mxu1 %vm238_vm1, %v13100_v26 }
 0x126   : > { %14289 = vmatpush3.msk.msra.mxu0 %vm245_vm0, %v15971_v35  ;;  %14294 = vmatpush3.msk.msra.mxu1 %vm245_vm0, %v15971_v35 }
 0x127   : > { %14290 = vmatprep.mubr.msk.f32.mxu0 %vm238_vm1, %v13101_v27  ;;  %14295 = vmatprep.mubr.msk.f32.mxu1 %vm238_vm1, %v13103_v29 }
 0x128   : > { %14298 = vmatprep.subr.msk.mxu0 %vm245_vm0, %v15971_v35  ;;  %14303 = vmatprep.subr.msk.mxu1 %vm245_vm0, %v15971_v35 }
 0x129   : > { %14291 = vmatmul.mubr.msk.f32.vlgmr.msra.gmra.mrb[10].mxu0 %vm238_vm1, %v13102_v34  ;;  %14296 = vmatmul.mubr.msk.f32.vlgmr.msra.gmra.mrb[10].mxu1 %vm238_vm1, %v13104_v37 }
 0x12a   : > { %14299 = vmatpush3.msk.msra.mxu0 %vm245_vm0, %v15971_v35  ;;  %14304 = vmatpush3.msk.msra.mxu1 %vm245_vm0, %v15971_v35 }
 0x12b   : > { %14300 = vmatprep.mubr.msk.f32.mxu0 %vm238_vm1, %v13105_v4  ;;  %14305 = vmatprep.mubr.msk.f32.mxu1 %vm238_vm1, %v13107_v5 }
 0x12c   : > { %14308 = vmatprep.subr.msk.mxu0 %vm245_vm0, %v15971_v35  ;;  %14313 = vmatprep.subr.msk.mxu1 %vm245_vm0, %v15971_v35 }
 0x12d   : > { %14301 = vmatmul.mubr.msk.f32.vlgmr.msra.gmra.mrb[12].mxu0 %vm238_vm1, %v13106_v8  ;;  %14306 = vmatmul.mubr.msk.f32.vlgmr.msra.gmra.mrb[12].mxu1 %vm238_vm1, %v13108_v33 }
 0x12e   : > { %14309 = vmatpush3.msk.msra.mxu0 %vm245_vm0, %v15971_v35  ;;  %14314 = vmatpush3.msk.msra.mxu1 %vm245_vm0, %v15971_v35 }
 0x12f   : > { %14310 = vmatprep.mubr.msk.f32.mxu0 %vm238_vm1, %v15692_v9  ;;  %14315 = vmatprep.mubr.msk.f32.mxu1 %vm238_vm1, %v13111_v28 }
 0x131   : > { %14311 = vmatmul.mubr.msk.f32.vlgmr.msra.gmra.mrb[14].mxu0 %vm238_vm1, %v15708_v30  ;;  %14316 = vmatmul.mubr.msk.f32.vlgmr.msra.gmra.mrb[14].mxu1 %vm238_vm1, %v13112_v32 }
 0x1e8   : > { %v14242_v9 = vpop.f32.mrb[0].mxu0  ;;  %v14247_v30 = vpop.f32.mrb[0].mxu1 }
 0x1e9   : > { %v12403_v39 = vadd.f32 %v14242_v9, %v16116_v38  ;;  %v12405_v40 = vadd.f32 %v14247_v30, %v16116_v38  ;;  %v11139_v41 = vpop.f32.mrb[1].mxu0  ;;  %v11220_v42 = vpop.f32.mrb[1].mxu1 }
 0x1ea   : > { %v12402_v43 = vadd.f32 %v16116_v38, %v11139_v41  ;;  %v12404_v44 = vadd.f32 %v16116_v38, %v11220_v42 }
 0x1eb   : > { %12436 = vst.msk [vmem:[%s16121_s16 + $0x8] sm:$0xff] %vm12434_vm2, %v12403_v39  ;;  %12438 = vst.msk [vmem:[%s16121_s16 + $0x18] sm:$0xff] %vm12434_vm2, %v12405_v40 }
 0x1ec   : > { %12435 = vst.msk [vmem:[%s16121_s16] sm:$0xff] %vm12434_vm2, %v12402_v43  ;;  %12437 = vst.msk [vmem:[%s16121_s16 + $0x10] sm:$0xff] %vm12434_vm2, %v12404_v44  ;;  %v14252_v45 = vpop.f32.mrb[2].mxu0  ;;  %v14257_v46 = vpop.f32.mrb[2].mxu1 }
 0x1ed   : > { %v12407_v47 = vadd.f32 %v14252_v45, %v16116_v38  ;;  %v12409_v48 = vadd.f32 %v14257_v46, %v16116_v38  ;;  %v11301_v49 = vpop.f32.mrb[3].mxu0  ;;  %v11382_v50 = vpop.f32.mrb[3].mxu1 }
 0x1ee   : > { %v12406_v51 = vadd.f32 %v16116_v38, %v11301_v49  ;;  %v12408_v52 = vadd.f32 %v16116_v38, %v11382_v50 }
 0x1ef   : > { %12440 = vst.msk [vmem:[%s16121_s16 + $0x28] sm:$0xff] %vm12434_vm2, %v12407_v47  ;;  %12442 = vst.msk [vmem:[%s16121_s16 + $0x38] sm:$0xff] %vm12434_vm2, %v12409_v48 }
 0x1f0   : > { %12439 = vst.msk [vmem:[%s16121_s16 + $0x20] sm:$0xff] %vm12434_vm2, %v12406_v51  ;;  %12441 = vst.msk [vmem:[%s16121_s16 + $0x30] sm:$0xff] %vm12434_vm2, %v12408_v52  ;;  %v14262_v53 = vpop.f32.mrb[4].mxu0  ;;  %v14267_v54 = vpop.f32.mrb[4].mxu1 }
 0x1f1   : > { %v12411_v55 = vadd.f32 %v14262_v53, %v16116_v38  ;;  %v12413_v56 = vadd.f32 %v14267_v54, %v16116_v38  ;;  %v11463_v57 = vpop.f32.mrb[5].mxu0  ;;  %v11544_v58 = vpop.f32.mrb[5].mxu1 }
 0x1f2   : > { %v12410_v59 = vadd.f32 %v16116_v38, %v11463_v57  ;;  %v12412_v60 = vadd.f32 %v16116_v38, %v11544_v58 }
 0x1f3   : > { %12444 = vst.msk [vmem:[%s16121_s16 + $0x48] sm:$0xff] %vm12434_vm2, %v12411_v55  ;;  %12446 = vst.msk [vmem:[%s16121_s16 + $0x58] sm:$0xff] %vm12434_vm2, %v12413_v56 }
 0x1f4   : > { %12443 = vst.msk [vmem:[%s16121_s16 + $0x40] sm:$0xff] %vm12434_vm2, %v12410_v59  ;;  %12445 = vst.msk [vmem:[%s16121_s16 + $0x50] sm:$0xff] %vm12434_vm2, %v12412_v60  ;;  %v14272_v61 = vpop.f32.mrb[6].mxu0  ;;  %v14277_v62 = vpop.f32.mrb[6].mxu1 }
 0x1f5   : > { %v12415_v63 = vadd.f32 %v14272_v61, %v16116_v38  ;;  %v12417_v1 = vadd.f32 %v14277_v62, %v16116_v38  ;;  %v11625_v3 = vpop.f32.mrb[7].mxu0  ;;  %v11706_v31 = vpop.f32.mrb[7].mxu1 }
 0x1f6   : > { %v12414_v36 = vadd.f32 %v16116_v38, %v11625_v3  ;;  %v12416_v35 = vadd.f32 %v16116_v38, %v11706_v31 }
 0x1f7   : > { %12448 = vst.msk [vmem:[%s16121_s16 + $0x68] sm:$0xff] %vm12434_vm2, %v12415_v63  ;;  %12450 = vst.msk [vmem:[%s16121_s16 + $0x78] sm:$0xff] %vm12434_vm2, %v12417_v1 }
 0x1f8   : > { %12447 = vst.msk [vmem:[%s16121_s16 + $0x60] sm:$0xff] %vm12434_vm2, %v12414_v36  ;;  %12449 = vst.msk [vmem:[%s16121_s16 + $0x70] sm:$0xff] %vm12434_vm2, %v12416_v35  ;;  %v14282_v0 = vpop.f32.mrb[8].mxu0  ;;  %v14287_v6 = vpop.f32.mrb[8].mxu1 }
 0x1f9   : > { %v12419_v10 = vadd.f32 %v14282_v0, %v16116_v38  ;;  %v12421_v2 = vadd.f32 %v14287_v6, %v16116_v38  ;;  %v11787_v11 = vpop.f32.mrb[9].mxu0  ;;  %v11868_v7 = vpop.f32.mrb[9].mxu1 }
 0x1fa   : > { %v12418_v12 = vadd.f32 %v16116_v38, %v11787_v11  ;;  %v12420_v13 = vadd.f32 %v16116_v38, %v11868_v7 }
 0x1fb   : > { %12452 = vst.msk [vmem:[%s16121_s16 + $0x88] sm:$0xff] %vm12434_vm2, %v12419_v10  ;;  %12454 = vst.msk [vmem:[%s16121_s16 + $0x98] sm:$0xff] %vm12434_vm2, %v12421_v2 }
 0x1fc   : > { %12451 = vst.msk [vmem:[%s16121_s16 + $0x80] sm:$0xff] %vm12434_vm2, %v12418_v12  ;;  %12453 = vst.msk [vmem:[%s16121_s16 + $0x90] sm:$0xff] %vm12434_vm2, %v12420_v13  ;;  %v14292_v14 = vpop.f32.mrb[10].mxu0  ;;  %v14297_v15 = vpop.f32.mrb[10].mxu1 }
 0x1fd   : > { %v12423_v16 = vadd.f32 %v14292_v14, %v16116_v38  ;;  %v12425_v17 = vadd.f32 %v14297_v15, %v16116_v38  ;;  %v11949_v18 = vpop.f32.mrb[11].mxu0  ;;  %v12030_v19 = vpop.f32.mrb[11].mxu1 }
 0x1fe   : > { %v12422_v20 = vadd.f32 %v16116_v38, %v11949_v18  ;;  %v12424_v21 = vadd.f32 %v16116_v38, %v12030_v19 }
 0x1ff   : > { %12456 = vst.msk [vmem:[%s16121_s16 + $0xa8] sm:$0xff] %vm12434_vm2, %v12423_v16  ;;  %12458 = vst.msk [vmem:[%s16121_s16 + $0xb8] sm:$0xff] %vm12434_vm2, %v12425_v17 }
 0x200   : > { %12455 = vst.msk [vmem:[%s16121_s16 + $0xa0] sm:$0xff] %vm12434_vm2, %v12422_v20  ;;  %12457 = vst.msk [vmem:[%s16121_s16 + $0xb0] sm:$0xff] %vm12434_vm2, %v12424_v21  ;;  %v14302_v22 = vpop.f32.mrb[12].mxu0  ;;  %v14307_v23 = vpop.f32.mrb[12].mxu1 }
 0x201   : > { %v12427_v24 = vadd.f32 %v14302_v22, %v16116_v38  ;;  %v12429_v25 = vadd.f32 %v14307_v23, %v16116_v38  ;;  %v12111_v26 = vpop.f32.mrb[13].mxu0  ;;  %v12192_v27 = vpop.f32.mrb[13].mxu1 }
 0x202   : > { %v12426_v29 = vadd.f32 %v16116_v38, %v12111_v26  ;;  %v12428_v34 = vadd.f32 %v16116_v38, %v12192_v27 }
 0x203   : > { %12460 = vst.msk [vmem:[%s16121_s16 + $0xc8] sm:$0xff] %vm12434_vm2, %v12427_v24  ;;  %12462 = vst.msk [vmem:[%s16121_s16 + $0xd8] sm:$0xff] %vm12434_vm2, %v12429_v25 }
 0x204   : > { %12459 = vst.msk [vmem:[%s16121_s16 + $0xc0] sm:$0xff] %vm12434_vm2, %v12426_v29  ;;  %12461 = vst.msk [vmem:[%s16121_s16 + $0xd0] sm:$0xff] %vm12434_vm2, %v12428_v34  ;;  %v14312_v37 = vpop.f32.mrb[14].mxu0  ;;  %v14317_v4 = vpop.f32.mrb[14].mxu1 }
 0x205   : > { %v12431_v5 = vadd.f32 %v14312_v37, %v16116_v38  ;;  %v12433_v8 = vadd.f32 %v14317_v4, %v16116_v38  ;;  %v12273_v33 = vpop.f32.mrb[15].mxu0  ;;  %v12354_v28 = vpop.f32.mrb[15].mxu1 }
 0x206   : > { %v12430_v32 = vadd.f32 %v16116_v38, %v12273_v33  ;;  %v12432_v9 = vadd.f32 %v16116_v38, %v12354_v28 }
 0x207   : > { %12464 = vst.msk [vmem:[%s16121_s16 + $0xe8] sm:$0xff] %vm12434_vm2, %v12431_v5  ;;  %12466 = vst.msk [vmem:[%s16121_s16 + $0xf8] sm:$0xff] %vm12434_vm2, %v12433_v8 }
 0x208   : > { %12463 = vst.msk [vmem:[%s16121_s16 + $0xe0] sm:$0xff] %vm12434_vm2, %v12430_v32  ;;  %12465 = vst.msk [vmem:[%s16121_s16 + $0xf0] sm:$0xff] %vm12434_vm2, %v12432_v9 }
 0x209 PF: > { %s13_s12 = sadd.s32 1, %s14589_s12  }
 0x20a   : > { %p10_p4 = scmp.ge.s32.totalorder %s13_s12, 4  }
 0x20c   :  { %12 = sbr.rel (!%p10_p4) target bundleno = 1 (0x1), region = 72 }

</bundles_post_ra>
